<compile_context>
chip_gen: v7x
topology: tpu7x:2x2x1
jax: 0.10.0
libtpu: 0.0.40
codegen_flags: <defaults>
</compile_context>

<pallas_src>
import functools
import math

import jax
import jax.numpy as jnp
from jax.experimental import pallas as pl
from jax.experimental.pallas import tpu as pltpu

LN_EPS = 1e-5                        # torch.nn.LayerNorm default
_INV_SQRT2 = 1.0 / math.sqrt(2.0)
_SQRT_2_OVER_PI = math.sqrt(2.0 / math.pi)
_LANE = 128
_SUBLANE = 8
_MIB = 1024 * 1024


def _round_up(x, m):
    return (x + m - 1) // m * m


def _vmem_capacity_bytes():
    """Per-core VMEM capacity; falls back to the tightest budget (v7x, 64 MiB)."""
    try:
        cap = int(getattr(pltpu.get_tpu_info(), "vmem_capacity_bytes", 0) or 0)
        if cap > 0:
            return cap
    except Exception:
        pass
    return 64 * _MIB


def _gelu(y, approximate):
    if approximate:
        # tanh GELU -> EUP (separate VLIW slot), cheaper than the erf VALU
        # polynomial in the VALU-bound small-nf regime.  Numerics differ
        # slightly from torch's exact-erf default, hence opt-in.
        return 0.5 * y * (1.0 + jnp.tanh(_SQRT_2_OVER_PI * (y + 0.044715 * y * y * y)))
    return 0.5 * y * (1.0 + jax.lax.erf(y * _INV_SQRT2))   # exact (torch default)


def _layernorm(v, gamma, beta, inv_nf, mask):
    """LayerNorm over the last axis with true-nf divisor.

    Padded feature lanes of `v` are exactly zero by construction (zero-padded
    activations, zero-padded weight columns and biases), so the mean needs no
    masking; only (v - mu) is re-masked so the -mu leakage in padded lanes does
    not corrupt the variance.  gamma/beta are zero-padded -> padded output
    lanes stay exactly zero.
    """
    if mask is None:
        mu = jnp.mean(v, axis=-1, keepdims=True)
        d = v - mu
    else:
        mu = jnp.sum(v, axis=-1, keepdims=True) * inv_nf
        d = (v - mu) * mask
    var = jnp.sum(d * d, axis=-1, keepdims=True) * inv_nf
    return d * jax.lax.rsqrt(var + LN_EPS) * gamma + beta


def _feature_mask(nf, nf_p):
    if nf == nf_p:
        return None
    return jnp.where(
        jax.lax.broadcasted_iota(jnp.int32, (1, nf_p), 1) < nf,
        jnp.float32(1.0), jnp.float32(0.0))


# --------------------------------------------------------------------------
# Path A: resident weights (1-D grid over row tiles).
# --------------------------------------------------------------------------
def _resident_kernel(nf, approx_gelu,
                     x_ref, g1_ref, bn1_ref, w1_ref, b1_ref, w2_ref, b2_ref,
                     g2_ref, bn2_ref, wp_ref, bp_ref, o_ref):
    nf_p = x_ref.shape[-1]
    cdt = w1_ref.dtype                      # MXU dtype for the dots
    inv_nf = 1.0 / nf
    mask = _feature_mask(nf, nf_p)

    x = x_ref[...].astype(jnp.float32)
    x1 = _layernorm(x, g1_ref[...].astype(jnp.float32),
                    bn1_ref[...].astype(jnp.float32), inv_nf, mask)

    y = jnp.dot(x1.astype(cdt), w1_ref[...], preferred_element_type=jnp.float32)
    y = _gelu(y + b1_ref[...].astype(jnp.float32), approx_gelu)

    y = jnp.dot(y.astype(cdt), w2_ref[...], preferred_element_type=jnp.float32)
    y = y + b2_ref[...].astype(jnp.float32)

    z = _layernorm(x1 + y, g2_ref[...].astype(jnp.float32),
                   bn2_ref[...].astype(jnp.float32), inv_nf, mask)
    out = jnp.dot(z.astype(cdt), wp_ref[...], preferred_element_type=jnp.float32)
    o_ref[...] = (out + bp_ref[...].astype(jnp.float32)).astype(o_ref.dtype)


# --------------------------------------------------------------------------
# Path B: hidden-dim (2*nf) tiled conv1/conv2 for large nf (VMEM-tight chips).
# Grid = (row_tiles [parallel], hidden_tiles [arbitrary]); norm1 output and the
# conv2 accumulator live in VMEM scratch across the hidden axis.
# --------------------------------------------------------------------------
def _hidden_tiled_kernel(nf, approx_gelu,
                         x_ref, g1_ref, bn1_ref, w1_ref, b1_ref, w2_ref, b2_ref,
                         g2_ref, bn2_ref, wp_ref, bp_ref, o_ref,
                         x1_sc, acc_sc):
    nf_p = x_ref.shape[-1]
    cdt = w1_ref.dtype
    inv_nf = 1.0 / nf
    mask = _feature_mask(nf, nf_p)
    h = pl.program_id(1)

    @pl.when(h == 0)
    def _():
        x = x_ref[...].astype(jnp.float32)
        x1_sc[...] = _layernorm(x, g1_ref[...].astype(jnp.float32),
                                bn1_ref[...].astype(jnp.float32), inv_nf, mask)
        acc_sc[...] = jnp.zeros_like(acc_sc)

    # Streamed hidden tile: y_h = gelu(x1 @ w1[:, h] + b1[h]);  acc += y_h @ w2[h, :]
    y = jnp.dot(x1_sc[...].astype(cdt), w1_ref[...],
                preferred_element_type=jnp.float32)
    y = _gelu(y + b1_ref[...].astype(jnp.float32), approx_gelu)
    acc_sc[...] += jnp.dot(y.astype(cdt), w2_ref[...],
                           preferred_element_type=jnp.float32)

    @pl.when(h == pl.num_programs(1) - 1)
    def _():
        yf = acc_sc[...] + b2_ref[...].astype(jnp.float32)
        z = _layernorm(x1_sc[...] + yf, g2_ref[...].astype(jnp.float32),
                       bn2_ref[...].astype(jnp.float32), inv_nf, mask)
        out = jnp.dot(z.astype(cdt), wp_ref[...],
                      preferred_element_type=jnp.float32)
        o_ref[...] = (out + bp_ref[...].astype(jnp.float32)).astype(o_ref.dtype)


# --------------------------------------------------------------------------
# Wrapper.
# --------------------------------------------------------------------------
def prepare_params(params, nf, *, compute_dtype=jnp.bfloat16):
    """Pad parameters to lane-dense (128-multiple) shapes and cast the matmul
    weights ONCE.  Call this at init time; the result is reused every forward,
    removing the per-call pad/cast HBM traffic from the hot path."""
    nf2 = 2 * nf
    tw = params["wp"].shape[1]
    nf_p = _round_up(nf, _LANE)
    nf2_p = _round_up(nf2, _LANE)
    tw_p = _round_up(tw, _LANE)

    def pad2(a, r, c, dtype=None):
        a = jnp.pad(a, ((0, r - a.shape[0]), (0, c - a.shape[1])))
        return a if dtype is None else a.astype(dtype)

    return {
        "nf": nf, "tw": tw,
        "g1": pad2(params["g1"], 1, nf_p), "bn1": pad2(params["bn1"], 1, nf_p),
        "w1": pad2(params["w1"], nf_p, nf2_p, compute_dtype),
        "b1": pad2(params["b1"], 1, nf2_p),
        "w2": pad2(params["w2"], nf2_p, nf_p, compute_dtype),
        "b2": pad2(params["b2"], 1, nf_p),
        "g2": pad2(params["g2"], 1, nf_p), "bn2": pad2(params["bn2"], 1, nf_p),
        "wp": pad2(params["wp"], nf_p, tw_p, compute_dtype),
        "bp": pad2(params["bp"], 1, tw_p),
    }


def flatten_head(x, p, *, tm=None, hidden_tile=None, force_hidden_tiling=False,
                 approximate_gelu=False):
    """x: [B, n_vars, d_model, patch_num] -> [B, n_vars, target_window].
    `p` must come from prepare_params (already padded / cast)."""
    B, n_vars, d_model, patch_num = x.shape
    nf, tw = p["nf"], p["tw"]
    assert nf == d_model * patch_num, "params were prepared for a different nf"
    nf_p = p["g1"].shape[1]
    nf2_p = p["b1"].shape[1]
    tw_p = p["bp"].shape[1]
    M = B * n_vars
    xsz = jnp.dtype(x.dtype).itemsize
    csz = jnp.dtype(p["w1"].dtype).itemsize
    cap = _vmem_capacity_bytes()
    headroom = 8 * _MIB

    # Row tile: 256 for large M (fewer grid-step overheads, better MXU
    # streaming on the 256-wide v6e/v7x arrays), 128 otherwise; keep >= 2 grid
    # steps when M allows and keep the double-buffered x tile modest.
    if tm is None:
        tm = 256 if M >= 512 else 128
        while tm > 128 and 2 * tm * nf_p * xsz > cap // 8:
            tm //= 2
    tm = max(_SUBLANE, _round_up(min(tm, _round_up(M, _SUBLANE)), _SUBLANE))
    M_p = _round_up(M, tm)
    n_row_tiles = M_p // tm

    # Activations: reshape is free; only pad when actually ragged.
    xf = x.reshape(M, nf)
    if M_p != M or nf_p != nf:
        xf = jnp.pad(xf, ((0, M_p - M), (0, nf_p - nf)))

    # Resident-path VMEM estimate (no 2x hedge; explicit headroom instead).
    weight_bytes = ((nf_p * nf2_p + nf2_p * nf_p + nf_p * tw_p) * csz
                    + (6 * nf_p + nf2_p + tw_p) * 4)
    tile_bytes = 2 * tm * nf_p * xsz + 2 * tm * tw_p * xsz
    temp_bytes = (3 * tm * nf_p + 2 * tm * nf2_p) * 4
    resident_est = weight_bytes + tile_bytes + temp_bytes

    use_hidden = force_hidden_tiling or resident_est > int(0.7 * (cap - headroom))

    if not use_hidden:
        # ---------------- Path A: resident weights ----------------
        def cspec(r, c):
            # Constant-index operands: fetched once, single-buffered (a second
            # pipeline buffer would be pure VMEM waste for data that never changes).
            return pl.BlockSpec((r, c), lambda i: (0, 0),
                                pipeline_mode=pl.Buffered(1))

        grid = (n_row_tiles,)
        in_specs = [
            pl.BlockSpec((tm, nf_p), lambda i: (i, 0)),       # x row tile
            cspec(1, nf_p), cspec(1, nf_p),                   # norm1 g/b
            cspec(nf_p, nf2_p), cspec(1, nf2_p),              # conv1 W/b
            cspec(nf2_p, nf_p), cspec(1, nf_p),               # conv2 W/b
            cspec(1, nf_p), cspec(1, nf_p),                   # norm2 g/b
            cspec(nf_p, tw_p), cspec(1, tw_p),                # proj W/b
        ]
        out_specs = pl.BlockSpec((tm, tw_p), lambda i: (i, 0))
        scratch_shapes = []
        kernel = functools.partial(_resident_kernel, nf, approximate_gelu)
        dim_sem = ("parallel",)
        est = resident_est
        weight_traffic = weight_bytes
    else:
        # ---------------- Path B: hidden-dim tiled ----------------
        if hidden_tile is None:
            # 256-multiples preferred (v6e/v7x MXU granule); must divide nf2_p.
            hidden_tile = next(c for c in (512, 384, 256, 128) if nf2_p % c == 0)
        th = min(hidden_tile, nf2_p)
        assert nf2_p % th == 0 and th % _LANE == 0, "hidden_tile must divide padded 2*nf"
        nh = nf2_p // th

        def cspec(r, c):
            return pl.BlockSpec((r, c), lambda i, h: (0, 0),
                                pipeline_mode=pl.Buffered(1))

        grid = (n_row_tiles, nh)
        in_specs = [
            pl.BlockSpec((tm, nf_p), lambda i, h: (i, 0)),    # x row tile (const over h)
            cspec(1, nf_p), cspec(1, nf_p),                   # norm1 g/b
            pl.BlockSpec((nf_p, th), lambda i, h: (0, h)),    # conv1 W col tile
            pl.BlockSpec((1, th), lambda i, h: (0, h)),       # conv1 b tile
            pl.BlockSpec((th, nf_p), lambda i, h: (h, 0)),    # conv2 W row tile
            cspec(1, nf_p),                                   # conv2 b
            cspec(1, nf_p), cspec(1, nf_p),                   # norm2 g/b
            cspec(nf_p, tw_p), cspec(1, tw_p),                # proj W/b (resident)
        ]
        out_specs = pl.BlockSpec((tm, tw_p), lambda i, h: (i, 0))
        scratch_shapes = [pltpu.VMEM((tm, nf_p), jnp.float32),   # norm1(x) cache
                          pltpu.VMEM((tm, nf_p), jnp.float32)]   # conv2 accumulator
        kernel = functools.partial(_hidden_tiled_kernel, nf, approximate_gelu)
        dim_sem = ("parallel", "arbitrary")
        est = (2 * 2 * nf_p * th * csz             # w1/w2 tiles, double-buffered
               + nf_p * tw_p * csz                 # resident proj weight
               + (6 * nf_p + tw_p + 2 * th) * 4    # LN params / biases
               + tile_bytes
               + 2 * tm * nf_p * 4                 # scratch (x1 + acc)
               + (2 * tm * th + 2 * tm * nf_p) * 4)
        weight_traffic = (n_row_tiles * 2 * nf_p * nf2_p * csz
                          + nf_p * tw_p * csz + (6 * nf_p + nf2_p + tw_p) * 4)

    # Never request the full physical VMEM: leave headroom for Mosaic scratch.
    vmem_limit = int(min(max(est, 32 * _MIB), cap - headroom))

    flops = 2 * M_p * (2 * nf_p * nf2_p + nf_p * tw_p)
    cost = pl.CostEstimate(
        flops=int(flops),
        transcendentals=int(M_p * nf2_p),
        bytes_accessed=int(M_p * nf_p * xsz + M_p * tw_p * xsz + weight_traffic))

    out2d = pl.pallas_call(
        kernel,
        out_shape=jax.ShapeDtypeStruct((M_p, tw_p), x.dtype),
        grid_spec=pltpu.PrefetchScalarGridSpec(
            num_scalar_prefetch=0,
            grid=grid,
            in_specs=in_specs,
            out_specs=out_specs,
            scratch_shapes=scratch_shapes,
        ),
        compiler_params=pltpu.CompilerParams(
            dimension_semantics=dim_sem,
            vmem_limit_bytes=vmem_limit,
        ),
        cost_estimate=cost,
    )(xf, p["g1"], p["bn1"], p["w1"], p["b1"], p["w2"], p["b2"],
      p["g2"], p["bn2"], p["wp"], p["bp"])

    if M_p != M or tw_p != tw:
        out2d = out2d[:M, :tw]
    return out2d.reshape(B, n_vars, tw)


# --------------------------------------------------------------------------
# Synthetic parameters + pure-JAX reference (validation).
# --------------------------------------------------------------------------
def init_params(key, nf, target_window, dtype=jnp.float32):
    """Deterministic synthetic parameters (shapes match the nn.Module).
    Conv1d weights [out, in, 1] are stored transposed as [in, out] so the 1x1
    conv is a right-matmul; Linear(nf, tw) weight [tw, nf] -> [nf, tw]."""
    ks = jax.random.split(key, 6)
    nf2 = 2 * nf
    w1 = jax.random.normal(ks[0], (nf, nf2), dtype) * 0.05
    b1 = jax.random.normal(ks[1], (1, nf2), dtype) * 0.05
    w2 = jax.random.normal(ks[2], (nf2, nf), dtype) * 0.05
    b2 = jax.random.normal(ks[3], (1, nf), dtype) * 0.05
    wp = jax.random.normal(ks[4], (nf, target_window), dtype) * 0.05
    bp = jax.random.normal(ks[5], (1, target_window), dtype) * 0.05
    return {
        "g1": jnp.ones((1, nf), dtype), "bn1": jnp.zeros((1, nf), dtype),
        "w1": w1, "b1": b1, "w2": w2, "b2": b2,
        "g2": jnp.ones((1, nf), dtype), "bn2": jnp.zeros((1, nf), dtype),
        "wp": wp, "bp": bp,
    }


def _layernorm_ref(v, gamma, beta):
    mu = jnp.mean(v, axis=-1, keepdims=True)
    var = jnp.mean((v - mu) ** 2, axis=-1, keepdims=True)
    return (v - mu) * jax.lax.rsqrt(var + LN_EPS) * gamma + beta


def flatten_head_ref(x, params, *, approximate_gelu=False):
    """Pure-JAX reference mirroring the PyTorch forward."""
    B, n_vars, d_model, patch_num = x.shape
    nf = d_model * patch_num
    with jax.default_matmul_precision("highest"):
        xf = x.reshape(B, n_vars, nf).astype(jnp.float32)
        x1 = _layernorm_ref(xf, params["g1"][0], params["bn1"][0])
        y = x1 @ params["w1"] + params["b1"][0]
        y = _gelu(y, approximate_gelu)
        y = y @ params["w2"] + params["b2"][0]
        z = _layernorm_ref(x1 + y, params["g2"][0], params["bn2"][0])
        return z @ params["wp"] + params["bp"][0]


if __name__ == "__main__":
    # M = B*n_vars = 256 -> 2 parallel row tiles; nf = 96 and target_window = 96
    # exercise the lane padding (96 -> 128) and the masked-LayerNorm path.
    B, n_vars, d_model, patch_num = 4, 64, 16, 6
    nf = d_model * patch_num          # 96
    target_window = 96

    key = jax.random.PRNGKey(0)
    kx, kp = jax.random.split(key)
    x = jax.random.normal(kx, (B, n_vars, d_model, patch_num), jnp.float32)
    params = init_params(kp, nf, target_window)
    ref = flatten_head_ref(x, params)

    # 1) f32 resident-weight path: tight check of padding / masked-LN logic.
    p_f32 = prepare_params(params, nf, compute_dtype=jnp.float32)
    out = jax.block_until_ready(flatten_head(x, p_f32))
    assert out.shape == (B, n_vars, target_window)
    err = float(jnp.max(jnp.abs(out - ref)))
    assert err < 2e-3, f"f32 resident path max err {err}"

    # 2) Default fast path: bf16 weights on the MXU, f32 accumulation.
    p_bf16 = prepare_params(params, nf)           # pad + cast happens ONCE here
    out = jax.block_until_ready(flatten_head(x, p_bf16))
    assert out.shape == (B, n_vars, target_window)
    err = float(jnp.max(jnp.abs(out - ref)))
    assert err < 5e-2, f"bf16 resident path max err {err}"

    # 3) Hidden-dim (2*nf) tiled path, forced at small size with hidden_tile=128
    #    so the second grid axis and the VMEM accumulator are exercised (nh=2).
    out = jax.block_until_ready(
        flatten_head(x, p_bf16, force_hidden_tiling=True, hidden_tile=128))
    err = float(jnp.max(jnp.abs(out - ref)))
    assert err < 5e-2, f"bf16 hidden-tiled path max err {err}"

    # 4) Opt-in EUP-routed tanh GELU (compared against a tanh-GELU reference).
    ref_tanh = flatten_head_ref(x, params, approximate_gelu=True)
    out = jax.block_until_ready(flatten_head(x, p_bf16, approximate_gelu=True))
    err = float(jnp.max(jnp.abs(out - ref_tanh)))
    assert err < 5e-2, f"bf16 tanh-GELU path max err {err}"

    print("KERNEL_OK")
</pallas_src>

<mosaic_0001>
module attributes {stable_mosaic.version = 11 : i64} {
  func.func @_resident_kernel(%arg0: i32, %arg1: memref<128x128xf32, #tpu.memory_space<vmem>>, %arg2: memref<1x128xf32, #tpu.memory_space<vmem>>, %arg3: memref<1x128xf32, #tpu.memory_space<vmem>>, %arg4: memref<128x256xf32, #tpu.memory_space<vmem>>, %arg5: memref<1x256xf32, #tpu.memory_space<vmem>>, %arg6: memref<256x128xf32, #tpu.memory_space<vmem>>, %arg7: memref<1x128xf32, #tpu.memory_space<vmem>>, %arg8: memref<1x128xf32, #tpu.memory_space<vmem>>, %arg9: memref<1x128xf32, #tpu.memory_space<vmem>>, %arg10: memref<128x128xf32, #tpu.memory_space<vmem>>, %arg11: memref<1x128xf32, #tpu.memory_space<vmem>>, %arg12: memref<128x128xf32, #tpu.memory_space<vmem>>) attributes {dimension_semantics = [#tpu.dimension_semantics<parallel>], iteration_bounds = array<i64: 2>, scalar_prefetch = 0 : i64, scratch_operands = 0 : i64, tpu.core_type = #tpu.core_type<tc>, window_params = [{transform_indices = @transform_0, window_bounds = array<i64: 128, 128>}, {pipeline_mode = #tpu.pipeline_mode<synchronous>, transform_indices = @transform_1, window_bounds = array<i64: 1, 128>}, {pipeline_mode = #tpu.pipeline_mode<synchronous>, transform_indices = @transform_2, window_bounds = array<i64: 1, 128>}, {pipeline_mode = #tpu.pipeline_mode<synchronous>, transform_indices = @transform_3, window_bounds = array<i64: 128, 256>}, {pipeline_mode = #tpu.pipeline_mode<synchronous>, transform_indices = @transform_4, window_bounds = array<i64: 1, 256>}, {pipeline_mode = #tpu.pipeline_mode<synchronous>, transform_indices = @transform_5, window_bounds = array<i64: 256, 128>}, {pipeline_mode = #tpu.pipeline_mode<synchronous>, transform_indices = @transform_6, window_bounds = array<i64: 1, 128>}, {pipeline_mode = #tpu.pipeline_mode<synchronous>, transform_indices = @transform_7, window_bounds = array<i64: 1, 128>}, {pipeline_mode = #tpu.pipeline_mode<synchronous>, transform_indices = @transform_8, window_bounds = array<i64: 1, 128>}, {pipeline_mode = #tpu.pipeline_mode<synchronous>, transform_indices = @transform_9, window_bounds = array<i64: 128, 128>}, {pipeline_mode = #tpu.pipeline_mode<synchronous>, transform_indices = @transform_10, window_bounds = array<i64: 1, 128>}, {transform_indices = @transform_11, window_bounds = array<i64: 128, 128>}]} {
    %0 = tpu.iota {dimensions = array<i32: 1>} : vector<1x128xi32>
    %c96_i32 = arith.constant 96 : i32
    %1 = vector.broadcast %c96_i32 : i32 to vector<1x128xi32>
    %2 = arith.cmpi slt, %0, %1 : vector<1x128xi32>
    %cst = arith.constant 1.000000e+00 : f32
    %cst_0 = arith.constant 0.000000e+00 : f32
    %3 = vector.broadcast %cst : f32 to vector<1x128xf32>
    %4 = vector.broadcast %cst_0 : f32 to vector<1x128xf32>
    %5 = arith.select %2, %3, %4 : vector<1x128xi1>, vector<1x128xf32>
    %c0 = arith.constant 0 : index
    %c0_1 = arith.constant 0 : index
    %6 = vector.load %arg1[%c0, %c0_1] : memref<128x128xf32, #tpu.memory_space<vmem>>, vector<128x128xf32>
    %c0_2 = arith.constant 0 : index
    %c0_3 = arith.constant 0 : index
    %7 = vector.load %arg2[%c0_2, %c0_3] : memref<1x128xf32, #tpu.memory_space<vmem>>, vector<1x128xf32>
    %c0_4 = arith.constant 0 : index
    %c0_5 = arith.constant 0 : index
    %8 = vector.load %arg3[%c0_4, %c0_5] : memref<1x128xf32, #tpu.memory_space<vmem>>, vector<1x128xf32>
    %cst_6 = arith.constant dense<0.000000e+00> : vector<128xf32>
    %9 = vector.multi_reduction <add>, %6, %cst_6 [1] : vector<128x128xf32> to vector<128xf32>
    %10 = vector.shape_cast %9 : vector<128xf32> to vector<128x1xf32>
    %cst_7 = arith.constant 0.010416667 : f32
    %11 = vector.broadcast %cst_7 : f32 to vector<128x1xf32>
    %12 = arith.mulf %10, %11 : vector<128x1xf32>
    %13 = vector.broadcast %12 : vector<128x1xf32> to vector<128x128xf32>
    %14 = arith.subf %6, %13 : vector<128x128xf32>
    %15 = vector.broadcast %5 : vector<1x128xf32> to vector<128x128xf32>
    %16 = arith.mulf %14, %15 : vector<128x128xf32>
    %17 = arith.mulf %16, %16 : vector<128x128xf32>
    %cst_8 = arith.constant dense<0.000000e+00> : vector<128xf32>
    %18 = vector.multi_reduction <add>, %17, %cst_8 [1] : vector<128x128xf32> to vector<128xf32>
    %19 = vector.shape_cast %18 : vector<128xf32> to vector<128x1xf32>
    %cst_9 = arith.constant 0.010416667 : f32
    %20 = vector.broadcast %cst_9 : f32 to vector<128x1xf32>
    %21 = arith.mulf %19, %20 : vector<128x1xf32>
    %cst_10 = arith.constant 9.99999974E-6 : f32
    %22 = vector.broadcast %cst_10 : f32 to vector<128x1xf32>
    %23 = arith.addf %21, %22 : vector<128x1xf32>
    %24 = math.rsqrt %23 : vector<128x1xf32>
    %25 = vector.broadcast %24 : vector<128x1xf32> to vector<128x128xf32>
    %26 = arith.mulf %16, %25 : vector<128x128xf32>
    %27 = vector.broadcast %7 : vector<1x128xf32> to vector<128x128xf32>
    %28 = arith.mulf %26, %27 : vector<128x128xf32>
    %29 = vector.broadcast %8 : vector<1x128xf32> to vector<128x128xf32>
    %30 = arith.addf %28, %29 : vector<128x128xf32>
    %c0_11 = arith.constant 0 : index
    %c0_12 = arith.constant 0 : index
    %31 = vector.load %arg4[%c0_11, %c0_12] : memref<128x256xf32, #tpu.memory_space<vmem>>, vector<128x256xf32>
    %cst_13 = arith.constant dense<0.000000e+00> : vector<128x256xf32>
    %32 = tpu.matmul %30, %31, %cst_13 {dimension_numbers = #tpu.dot_dimension_numbers<[1], [0], [0], [1], [0, 0, 1, 1], [], []>} : vector<128x128xf32>, vector<128x256xf32>, vector<128x256xf32> -> vector<128x256xf32>
    %c0_14 = arith.constant 0 : index
    %c0_15 = arith.constant 0 : index
    %33 = vector.load %arg5[%c0_14, %c0_15] : memref<1x256xf32, #tpu.memory_space<vmem>>, vector<1x256xf32>
    %34 = vector.broadcast %33 : vector<1x256xf32> to vector<128x256xf32>
    %35 = arith.addf %32, %34 : vector<128x256xf32>
    %cst_16 = arith.constant 5.000000e-01 : f32
    %36 = vector.broadcast %cst_16 : f32 to vector<128x256xf32>
    %37 = arith.mulf %36, %35 : vector<128x256xf32>
    %cst_17 = arith.constant 0.707106769 : f32
    %38 = vector.broadcast %cst_17 : f32 to vector<128x256xf32>
    %39 = arith.mulf %35, %38 : vector<128x256xf32>
    %40 = math.erf %39 : vector<128x256xf32>
    %cst_18 = arith.constant 1.000000e+00 : f32
    %41 = vector.broadcast %cst_18 : f32 to vector<128x256xf32>
    %42 = arith.addf %41, %40 : vector<128x256xf32>
    %43 = arith.mulf %37, %42 : vector<128x256xf32>
    %c0_19 = arith.constant 0 : index
    %c0_20 = arith.constant 0 : index
    %44 = vector.load %arg6[%c0_19, %c0_20] : memref<256x128xf32, #tpu.memory_space<vmem>>, vector<256x128xf32>
    %cst_21 = arith.constant dense<0.000000e+00> : vector<128x128xf32>
    %45 = tpu.matmul %43, %44, %cst_21 {dimension_numbers = #tpu.dot_dimension_numbers<[1], [0], [0], [1], [0, 0, 1, 1], [], []>} : vector<128x256xf32>, vector<256x128xf32>, vector<128x128xf32> -> vector<128x128xf32>
    %c0_22 = arith.constant 0 : index
    %c0_23 = arith.constant 0 : index
    %46 = vector.load %arg7[%c0_22, %c0_23] : memref<1x128xf32, #tpu.memory_space<vmem>>, vector<1x128xf32>
    %47 = vector.broadcast %46 : vector<1x128xf32> to vector<128x128xf32>
    %48 = arith.addf %45, %47 : vector<128x128xf32>
    %49 = arith.addf %30, %48 : vector<128x128xf32>
    %c0_24 = arith.constant 0 : index
    %c0_25 = arith.constant 0 : index
    %50 = vector.load %arg8[%c0_24, %c0_25] : memref<1x128xf32, #tpu.memory_space<vmem>>, vector<1x128xf32>
    %c0_26 = arith.constant 0 : index
    %c0_27 = arith.constant 0 : index
    %51 = vector.load %arg9[%c0_26, %c0_27] : memref<1x128xf32, #tpu.memory_space<vmem>>, vector<1x128xf32>
    %cst_28 = arith.constant dense<0.000000e+00> : vector<128xf32>
    %52 = vector.multi_reduction <add>, %49, %cst_28 [1] : vector<128x128xf32> to vector<128xf32>
    %53 = vector.shape_cast %52 : vector<128xf32> to vector<128x1xf32>
    %cst_29 = arith.constant 0.010416667 : f32
    %54 = vector.broadcast %cst_29 : f32 to vector<128x1xf32>
    %55 = arith.mulf %53, %54 : vector<128x1xf32>
    %56 = vector.broadcast %55 : vector<128x1xf32> to vector<128x128xf32>
    %57 = arith.subf %49, %56 : vector<128x128xf32>
    %58 = vector.broadcast %5 : vector<1x128xf32> to vector<128x128xf32>
    %59 = arith.mulf %57, %58 : vector<128x128xf32>
    %60 = arith.mulf %59, %59 : vector<128x128xf32>
    %cst_30 = arith.constant dense<0.000000e+00> : vector<128xf32>
    %61 = vector.multi_reduction <add>, %60, %cst_30 [1] : vector<128x128xf32> to vector<128xf32>
    %62 = vector.shape_cast %61 : vector<128xf32> to vector<128x1xf32>
    %cst_31 = arith.constant 0.010416667 : f32
    %63 = vector.broadcast %cst_31 : f32 to vector<128x1xf32>
    %64 = arith.mulf %62, %63 : vector<128x1xf32>
    %cst_32 = arith.constant 9.99999974E-6 : f32
    %65 = vector.broadcast %cst_32 : f32 to vector<128x1xf32>
    %66 = arith.addf %64, %65 : vector<128x1xf32>
    %67 = math.rsqrt %66 : vector<128x1xf32>
    %68 = vector.broadcast %67 : vector<128x1xf32> to vector<128x128xf32>
    %69 = arith.mulf %59, %68 : vector<128x128xf32>
    %70 = vector.broadcast %50 : vector<1x128xf32> to vector<128x128xf32>
    %71 = arith.mulf %69, %70 : vector<128x128xf32>
    %72 = vector.broadcast %51 : vector<1x128xf32> to vector<128x128xf32>
    %73 = arith.addf %71, %72 : vector<128x128xf32>
    %c0_33 = arith.constant 0 : index
    %c0_34 = arith.constant 0 : index
    %74 = vector.load %arg10[%c0_33, %c0_34] : memref<128x128xf32, #tpu.memory_space<vmem>>, vector<128x128xf32>
    %cst_35 = arith.constant dense<0.000000e+00> : vector<128x128xf32>
    %75 = tpu.matmul %73, %74, %cst_35 {dimension_numbers = #tpu.dot_dimension_numbers<[1], [0], [0], [1], [0, 0, 1, 1], [], []>} : vector<128x128xf32>, vector<128x128xf32>, vector<128x128xf32> -> vector<128x128xf32>
    %c0_36 = arith.constant 0 : index
    %c0_37 = arith.constant 0 : index
    %76 = vector.load %arg11[%c0_36, %c0_37] : memref<1x128xf32, #tpu.memory_space<vmem>>, vector<1x128xf32>
    %77 = vector.broadcast %76 : vector<1x128xf32> to vector<128x128xf32>
    %78 = arith.addf %75, %77 : vector<128x128xf32>
    %c0_38 = arith.constant 0 : index
    %c0_39 = arith.constant 0 : index
    %79 = vector.load %arg12[%c0_38, %c0_39] : memref<128x128xf32, #tpu.memory_space<vmem>>, vector<128x128xf32>
    tpu.vector_store %arg12[%c0_38, %c0_39], %78 {strides = array<i32>} : memref<128x128xf32, #tpu.memory_space<vmem>>, vector<128x128xf32>,
    return
  }
  func.func @transform_0(%arg0: i32) -> (i32, i32) {
    %c0_i32 = arith.constant 0 : i32
    %c0_i32_0 = arith.constant 0 : i32
    return %arg0, %c0_i32 : i32, i32
  }
  func.func @transform_1(%arg0: i32) -> (i32, i32) {
    %c0_i32 = arith.constant 0 : i32
    %c0_i32_0 = arith.constant 0 : i32
    %c0_i32_1 = arith.constant 0 : i32
    return %c0_i32, %c0_i32_0 : i32, i32
  }
  func.func @transform_2(%arg0: i32) -> (i32, i32) {
    %c0_i32 = arith.constant 0 : i32
    %c0_i32_0 = arith.constant 0 : i32
    %c0_i32_1 = arith.constant 0 : i32
    return %c0_i32, %c0_i32_0 : i32, i32
  }
  func.func @transform_3(%arg0: i32) -> (i32, i32) {
    %c0_i32 = arith.constant 0 : i32
    %c0_i32_0 = arith.constant 0 : i32
    %c0_i32_1 = arith.constant 0 : i32
    return %c0_i32, %c0_i32_0 : i32, i32
  }
  func.func @transform_4(%arg0: i32) -> (i32, i32) {
    %c0_i32 = arith.constant 0 : i32
    %c0_i32_0 = arith.constant 0 : i32
    %c0_i32_1 = arith.constant 0 : i32
    return %c0_i32, %c0_i32_0 : i32, i32
  }
  func.func @transform_5(%arg0: i32) -> (i32, i32) {
    %c0_i32 = arith.constant 0 : i32
    %c0_i32_0 = arith.constant 0 : i32
    %c0_i32_1 = arith.constant 0 : i32
    return %c0_i32, %c0_i32_0 : i32, i32
  }
  func.func @transform_6(%arg0: i32) -> (i32, i32) {
    %c0_i32 = arith.constant 0 : i32
    %c0_i32_0 = arith.constant 0 : i32
    %c0_i32_1 = arith.constant 0 : i32
    return %c0_i32, %c0_i32_0 : i32, i32
  }
  func.func @transform_7(%arg0: i32) -> (i32, i32) {
    %c0_i32 = arith.constant 0 : i32
    %c0_i32_0 = arith.constant 0 : i32
    %c0_i32_1 = arith.constant 0 : i32
    return %c0_i32, %c0_i32_0 : i32, i32
  }
  func.func @transform_8(%arg0: i32) -> (i32, i32) {
    %c0_i32 = arith.constant 0 : i32
    %c0_i32_0 = arith.constant 0 : i32
    %c0_i32_1 = arith.constant 0 : i32
    return %c0_i32, %c0_i32_0 : i32, i32
  }
  func.func @transform_9(%arg0: i32) -> (i32, i32) {
    %c0_i32 = arith.constant 0 : i32
    %c0_i32_0 = arith.constant 0 : i32
    %c0_i32_1 = arith.constant 0 : i32
    return %c0_i32, %c0_i32_0 : i32, i32
  }
  func.func @transform_10(%arg0: i32) -> (i32, i32) {
    %c0_i32 = arith.constant 0 : i32
    %c0_i32_0 = arith.constant 0 : i32
    %c0_i32_1 = arith.constant 0 : i32
    return %c0_i32, %c0_i32_0 : i32, i32
  }
  func.func @transform_11(%arg0: i32) -> (i32, i32) {
    %c0_i32 = arith.constant 0 : i32
    %c0_i32_0 = arith.constant 0 : i32
    return %arg0, %c0_i32 : i32, i32
  }
}

</mosaic_0001>

<bundles_post_ra>
// kernel: tpu_custom_call.1
= control target key start
LH: loop header
LB: loop body
LE: loop exit
PB: predicated region body
PF: predicated region fallthrough
CT: control target
= control target key end

     0   :  { %s3532_s0 = inlined_call_operand.hbm [shape: f32[256,128], index: 0, kind: input, shape index: {}]   ;;  %s3533_s1 = inlined_call_operand.vmem [shape: f32[1,128], index: 1, kind: input, shape index: {}]   ;;  %s3534_s2 = inlined_call_operand.vmem [shape: f32[1,128], index: 2, kind: input, shape index: {}]   ;;  %s3535_s3 = inlined_call_operand.hbm [shape: f32[128,256], index: 3, kind: input, shape index: {}]   ;;  %s3536_s4 = inlined_call_operand.vmem [shape: f32[1,256], index: 4, kind: input, shape index: {}]   ;;  %s3537_s5 = inlined_call_operand.hbm [shape: f32[256,128], index: 5, kind: input, shape index: {}]   ;;  %s3538_s6 = inlined_call_operand.vmem [shape: f32[1,128], index: 6, kind: input, shape index: {}]   ;;  %s3539_s7 = inlined_call_operand.vmem [shape: f32[1,128], index: 7, kind: input, shape index: {}]   ;;  %s3540_s8 = inlined_call_operand.vmem [shape: f32[1,128], index: 8, kind: input, shape index: {}]   ;;  %s3541_s9 = inlined_call_operand.hbm [shape: f32[128,128], index: 9, kind: input, shape index: {}]   ;;  %s3542_s10 = inlined_call_operand.vmem [shape: f32[1,128], index: 10, kind: input, shape index: {}]   ;;  %s3543_s11 = inlined_call_operand.hbm [shape: f32[256,128], index: 11, kind: output, shape index: {}]  }
   0x1   :  { %3550 = sst [smem:[#allocation17_spill]] %s3535_s3 }
   0x2   :  { %3551 = sst [smem:[#allocation18_spill]] %s3540_s8 }
   0x3   :  { %3552 = sst [smem:[#allocation19_spill]] %s3542_s10 }
   0x4   :  { %3553 = sst [smem:[#allocation20_spill]] %s3543_s11 }
   0x5   :  { %16 = vsyncpa [#allocation3], 0 }
   0x6   :  { %18 = vsyncpa [#allocation3 + $0x1], 0 }
   0x7   :  { %19 = vsyncpa [#allocation6], 0 }
   0x8   :  { %20 = vsyncpa [#allocation9], 0 }
   0x9   :  { %21 = vsyncpa [#allocation4], 0 }
   0xa   :  { %23 = vsyncpa [#allocation4 + $0x1], 0  ;;  %s2594_s17 = smov 0   ;;  %s2596_s18 = smov 0  }
   0xb   :  { %s2598_s19 = smov 0   ;;  %s2600_s20 = smov 0  }
   0xc LB: > { %3554 = sst [smem:[#allocation15_spill]] %s2508_s17  ;;  %s2615_s21 = sadd.s32 4294967295, %s2520_s20   ;;  %s2520_s20 = sphi %s2600_s20, %s3582_s20   ;;  %s2516_s19 = sphi %s2598_s19, %s3581_s19   ;;  %s2512_s18 = sphi %s2596_s18, %s3580_s18   ;;  %s2508_s17 = sphi %s2594_s17, %s3579_s17  }
   0xd   : > { %s1812_s22 = sadd.s32 4294967294, %s2520_s20   ;;  %p49_p0 = scmp.ne.s32.totalorder %s2512_s18, %s2508_s17 }
   0xe   : > { %p3544_p1 = scmp.eq.s32.totalorder %s2615_s21, 0  ;;  %p289_p3 = scmp.eq.s32.totalorder %s1812_s22, 1 }
   0xf   : > { %p1813_p5 = scmp.ge.s32.totalorder %s2520_s20, 1  ;;  %p296_p7 = scmp.lt.s32.totalorder %s2520_s20, 3 }
  0x10   : > { %p2624_p4 = por %p3544_p1, %p49_p0  ;;  %p2629_p6 = por %p289_p3, %p49_p0 }
  0x11   : > { %p2634_p8 = pnand %p1813_p5, %p296_p7  ;;  %s2522_s26 = smov [#allocation5]  }
  0x12   : > { %s3555_s23 = scalar_select %p2624_p4, 1, 0 }
  0x13   : > { %s3556_s24 = scalar_select %p2629_p6, 1, 0 }
  0x14   : > { %s3558_s25 = scalar_select %p2634_p8, 1, 0 }
  0x15   : > { %3557 = sst [smem:[#allocation16_spill]] %s3556_s24  ;;  %s314_s27 = sshll.u32 %s2522_s26, 4  ;;  %s2638_s27 = int_to_ptr.vmem [resolvable:$true] %s314_s27 }
  0x16   : > { %p2136_p9 = pneg %p2634_p8  ;;  %s2523_s29 = smov [#allocation7]  }
  0x17   : > { %s330_s30 = sshll.u32 %s2523_s29, 4  ;;  %s3560_s3 = sld [smem:[#allocation17_spill]]  ;;  %s2649_s30 = int_to_ptr.vmem [resolvable:$true] %s330_s30 }
  0x18   : > { %p2645_p11 = pnand %p2136_p9, %p3544_p1 }
  0x1a   : > { %p2659_p13 = pneg %p2645_p11 }
  0x1d   : > { %s2332_s14 = scalar_lea.hbm %s3560_s3, 4096 }
  0x1e   : > { %p2333_p12 = scmp.ne.s32.totalorder %s3560_s3, %s2332_s14  ;;  %p2339_p5 = scmp.lt.u32.totalorder %s2332_s14, %s3560_s3 }
  0x20   : > { %p2335_p0 = pnand %p2659_p13, %p2333_p12 }
  0x22   : > { %p2336_p3 = pneg %p2335_p0 }
  0x24   : > { %p2341_p7 = pnand %p2339_p5, %p2336_p3 }
  0x26   : > { %2344 = shalt.err (!%p2341_p7)
}
  0x27   : > { %s2345_s12 = scalar_lea.vmem %s2638_s27, 4096  ;;  %p2353_p2 = scmp.lt.s32.totalorder %s2638_s27, %s2638_s27 }
  0x28   : > { %p2346_p9 = scmp.ne.s32.totalorder %s2638_s27, %s2345_s12  ;;  %p2354_p6 = scmp.lt.s32.totalorder %s2345_s12, %s2345_s12 }
  0x2a   : > { %p2348_p10 = pnand %p2346_p9, %p2659_p13  ;;  %p2355_p12 = por %p2354_p6, %p2353_p2 }
  0x2c   : > { %p2349_p1 = pneg %p2348_p10 }
  0x2e   : > { %p2356_p0 = pnand %p2355_p12, %p2349_p1 }
  0x30   : > { %2359 = shalt.err (!%p2356_p0)
}
  0x31   : > { %s2524_s13 = smov 256   ;;  %s2525_s14 = smov 16  }
  0x32   : > { %2139 = dma.hbm_to_vmem [thread:$0]  (!%p2645_p11), %s3560_s3, 4096, %s2638_s27, [#allocation6], %s2524_s13, %s2524_s13, %s2525_s14  }
  0x33   : > { %s2360_s24 = scalar_lea.hbm %s3537_s5, 4096 }
  0x34   : > { %p2361_p2 = scmp.ne.s32.totalorder %s3537_s5, %s2360_s24  ;;  %p2367_p10 = scmp.lt.u32.totalorder %s2360_s24, %s3537_s5 }
  0x36   : > { %p2363_p1 = pnand %p2361_p2, %p2659_p13 }
  0x38   : > { %p2364_p6 = pneg %p2363_p1 }
  0x3a   : > { %p2369_p3 = pnand %p2367_p10, %p2364_p6 }
  0x3c   : > { %2372 = shalt.err (!%p2369_p3)
}
  0x3d   : > { %s2373_s27 = scalar_lea.vmem %s2649_s30, 4096  ;;  %p2381_p12 = scmp.lt.s32.totalorder %s2649_s30, %s2649_s30 }
  0x3e   : > { %p2374_p5 = scmp.ne.s32.totalorder %s2649_s30, %s2373_s27  ;;  %p2382_p0 = scmp.lt.s32.totalorder %s2373_s27, %s2373_s27 }
  0x40   : > { %p2376_p7 = pnand %p2374_p5, %p2659_p13  ;;  %p2383_p2 = por %p2382_p0, %p2381_p12 }
  0x42   : > { %p2377_p9 = pneg %p2376_p7 }
  0x44   : > { %p2384_p1 = pnand %p2383_p2, %p2377_p9 }
  0x46   : > { %2387 = shalt.err (!%p2384_p1)
}
  0x47   : > { %s2526_s11 = smov 128   ;;  %s2527_s10 = smov 8  }
  0x48   : > { %2142 = dma.hbm_to_vmem [thread:$0]  (!%p2645_p11), %s3537_s5, 4096, %s2649_s30, [#allocation6], %s2526_s11, %s2526_s11, %s2527_s10  }
  0x49   : > { %s2528_s13 = smov [#allocation8]   ;;  %s2707_s15 = sadd.s32 1, %s2520_s20  }
  0x4a   : > { %s352_s14 = sshll.u32 %s2528_s13, 4  ;;  %s2388_s29 = scalar_lea.hbm %s3541_s9, 2048  ;;  %s353_s14 = int_to_ptr.vmem [resolvable:$true] %s352_s14 }
  0x4b   : > { %p2389_p6 = scmp.ne.s32.totalorder %s3541_s9, %s2388_s29  ;;  %p2395_p5 = scmp.lt.u32.totalorder %s2388_s29, %s3541_s9 }
  0x4d   : > { %p2391_p10 = pnand %p2389_p6, %p2659_p13 }
  0x4f   : > { %p2392_p3 = pneg %p2391_p10 }
  0x51   : > { %p2397_p7 = pnand %p2395_p5, %p2392_p3 }
  0x53   : > { %2400 = shalt.err (!%p2397_p7)
}
  0x54   : > { %s2401_s30 = scalar_lea.vmem %s353_s14, 2048  ;;  %p2409_p2 = scmp.lt.s32.totalorder %s353_s14, %s353_s14 }
  0x55   : > { %p2402_p9 = scmp.ne.s32.totalorder %s353_s14, %s2401_s30  ;;  %p2410_p1 = scmp.lt.s32.totalorder %s2401_s30, %s2401_s30 }
  0x57   : > { %p2404_p12 = pnand %p2402_p9, %p2659_p13  ;;  %p2411_p4 = por %p2410_p1, %p2409_p2 }
  0x59   : > { %p2405_p0 = pneg %p2404_p12 }
  0x5b   : > { %p2412_p8 = pnand %p2411_p4, %p2405_p0 }
  0x5d   : > { %2415 = shalt.err (!%p2412_p8)
}
  0x5e   : > { %2145 = dma.hbm_to_vmem [thread:$0]  (!%p2645_p11), %s3541_s9, 2048, %s353_s14, [#allocation9], %s2526_s11, %s2526_s11, %s2527_s10  }
  0x5f   : > { %s33_s22 = ssub.s32 %s2520_s20, %s2707_s15  ;;  %s36_s28 = sadd.s32 1, %s2516_s19 }
  0x60   : > { %p34_p4 = scmp.eq.s32.totalorder %s33_s22, 0  ;;  %p43_p8 = scmp.ne.s32.totalorder %s2516_s19, %s2512_s18 }
  0x61   : > { %p44_p13 = scmp.eq.s32.totalorder %s2520_s20, 0  ;;  %p2157_p6 = scmp.lt.s32.totalorder %s2520_s20, 2 }
  0x62   : > { %s2738_s17 = scalar_select %p34_p4, %s2516_s19, %s36_s28  }
  0x63   : > { %p45_p10 = por %p44_p13, %p43_p8  ;;  %p3562_p3 = scmp.eq.s32.totalorder %s2615_s21, 1 }
  0x64   : > { %s369_s13 = sand.u32 1, %s2516_s19   ;;  %s1838_s16 = sshll.u32 %s2520_s20, 11 }
  0x65   : > { %p2742_p5 = por %p3562_p3, %p43_p8  ;;  %s1818_s26 = sshll.u32 %s369_s13, 7 }
  0x66   : > { %s2751_s14 = scalar_lea.hbm %s3532_s0, %s1838_s16  ;;  %s373_s27 = scalar_lea.vmem [#allocation2], %s1818_s26 }
  0x67   : > { %s380_s30 = sshll.u32 %s373_s27, 4  ;;  %p2753_p11 = pnand %p2157_p6, %p45_p10  ;;  %s2757_s30 = int_to_ptr.vmem [resolvable:$true] %s380_s30 }
  0x68   : > { %s2759_s8 = scalar_lea.sflag [#allocation3], %s369_s13  ;;  %s2416_s22 = scalar_lea.hbm %s2751_s14, 2048 }
  0x69   : > { %p2417_p7 = scmp.ne.s32.totalorder %s2751_s14, %s2416_s22  ;;  %p2418_p9 = pneg %p2753_p11 }
  0x6a   : > { %s2421_s26 = scalar_lea.hbm %s3532_s0, 4096  ;;  %p2422_p2 = scmp.lt.u32.totalorder %s2751_s14, %s3532_s0 }
  0x6b   : > { %p2419_p12 = pnand %p2418_p9, %p2417_p7  ;;  %p2423_p1 = scmp.lt.u32.totalorder %s2421_s26, %s2416_s22 }
  0x6c   : > { %p2425_p8 = scmp.lt.u32.totalorder %s2416_s22, %s2751_s14 }
  0x6d   : > { %p2420_p0 = pneg %p2419_p12  ;;  %p2424_p4 = por %p2423_p1, %p2422_p2 }
  0x6f   : > { %p2426_p13 = por %p2425_p8, %p2424_p4 }
  0x71   : > { %p2427_p6 = pnand %p2426_p13, %p2420_p0 }
  0x73   : > { %2430 = shalt.err (!%p2427_p6)
}
  0x74   : > { %s2431_s13 = scalar_lea.vmem %s2757_s30, 2048  ;;  %s2529_s27 = smov [#allocation2]  }
  0x75   : > { %p2432_p10 = scmp.ne.s32.totalorder %s2757_s30, %s2431_s13  ;;  %s2436_s28 = sshll.u32 %s2529_s27, 4  ;;  %s2437_s28 = int_to_ptr.vmem [resolvable:$false] %s2436_s28 }
  0x76   : > { %s2438_s16 = scalar_lea.vmem %s2437_s28, 4096  ;;  %p2439_p12 = scmp.lt.s32.totalorder %s2757_s30, %s2437_s28 }
  0x77   : > { %p2434_p3 = pnand %p2432_p10, %p2418_p9  ;;  %p2440_p2 = scmp.lt.s32.totalorder %s2438_s16, %s2431_s13 }
  0x79   : > { %p2435_p7 = pneg %p2434_p3  ;;  %p2441_p1 = por %p2440_p2, %p2439_p12 }
  0x7b   : > { %p2442_p4 = pnand %p2441_p1, %p2435_p7 }
  0x7d   : > { %2445 = shalt.err (!%p2442_p4)
}
  0x7e   : > { %2149 = dma.hbm_to_vmem [thread:$0]  (!%p2753_p11), %s2751_s14, 2048, %s2757_s30, %s2759_s8, %s2526_s11, %s2526_s11, %s2527_s10  }
  0x7f   : > { %p3565_p9 = scmp.ne.s32.totalorder %s3558_s25, 0 }
  0x80   : > { %s2793_s22 = sand.u32 (!%p3565_p9), 1, %s2512_s18   ;;  %p3566_p0 = scmp.ne.s32.totalorder (!%p3565_p9), %s3555_s23, 0 }
  0x81   : > { %392 = sbr.rel (%p3565_p9) target bundleno = 1513 (0x5e9), region = 64  ;;  %s1822_s26 = sshll.u32 (!%p3565_p9), %s2793_s22, 7 }
  0x82   : > { %s395_s29 = scalar_lea.sflag (!%p3565_p9), [#allocation3], %s2793_s22  ;;  %s2799_s3 = scalar_lea.vmem (!%p3565_p9), [#allocation2], %s1822_s26 }
  0x88   : > { %2491 = dma.done.wait (%p3566_p0), %s395_s29, 2048  }
  0x89   : > { %2493 = vsyncadd (%p3566_p0), %s395_s29, 4294965248  ;;  %p3567_p11 = scmp.eq.s32.totalorder %s2615_s21, 0 }
  0x8b   : > { %2495 = dma.done.wait (%p3567_p11), [#allocation6], 8192   ;;  %p3568_p8 = pmov %p3567_p11 }
  0x8d   : > { %2497 = vsyncadd (%p3568_p8), [#allocation6], 4294959104  ;;  %p3569_p13 = pmov %p3568_p8 }
  0x8e   : > { %p3570_p6 = pmov %p3568_p8 }
  0x8f   : > { %2499 = dma.done.wait (%p3569_p13), [#allocation9], 2048  }
  0x90   : > { %2501 = vsyncadd (%p3570_p6), [#allocation9], 4294965248  ;;  %v2814_v0 = vld [vmem:[%s2799_s3] sm:$0xff]  ;;  %v2817_v1 = vld [vmem:[%s2799_s3 + $0x10] sm:$0xff]  ;;  %v2530_v12 = vmov 0.0   ;;  %v451_v35 = vlaneseq  ;;  %s3571_s29 = sld [smem:[#allocation18_spill]] }
  0x91   : > { %473 = vadd.xlane.f32.xlu0 %v2814_v0  ;;  %477 = vadd.xlane.f32.xlu1 %v2817_v1  ;;  %v2822_v2 = vld [vmem:[%s2799_s3 + $0x8] sm:$0xff]  ;;  %v2825_v3 = vld [vmem:[%s2799_s3 + $0x18] sm:$0xff]  ;;  %v2830_v4 = vld [vmem:[%s2799_s3 + $0x20] sm:$0xff]  ;;  %s3572_s25 = sld [smem:[#allocation19_spill]]  ;;  %s3463_s11 = scalar_lea.vmem [#allocation10], %s1822_s26 }
  0x92   : > { %v2833_v5 = vld [vmem:[%s2799_s3 + $0x28] sm:$0xff]  ;;  %v2838_v6 = vld [vmem:[%s2799_s3 + $0x30] sm:$0xff]  ;;  %v2841_v7 = vld [vmem:[%s2799_s3 + $0x38] sm:$0xff]  ;;  %817 = vmatprep.mubr.f32.mxu0 %v2530_v12  ;;  %v452_v36 = vand.u32 127, %v451_v35  ;;  %s1839_s26 = sshll.u32 %s2615_s21, 11  ;;  %s1710_s10 = sshll.u32 %s3463_s11, 4  ;;  %s3486_s10 = int_to_ptr.vmem [resolvable:$true] %s1710_s10 }
  0x93   : > { %v2846_v8 = vld [vmem:[%s2799_s3 + $0x40] sm:$0xff]  ;;  %v2849_v9 = vld [vmem:[%s2799_s3 + $0x48] sm:$0xff]  ;;  %v2854_v10 = vld [vmem:[%s2799_s3 + $0x50] sm:$0xff]  ;;  %s3573_s8 = sld [smem:[#allocation20_spill]]  ;;  %s1697_s13 = scalar_lea.sflag [#allocation4], %s2793_s22 }
  0x94   : > { %v2857_v11 = vld [vmem:[%s2799_s3 + $0x58] sm:$0xff]  ;;  %v2863_v13 = vld [vmem:[%s2799_s3 + $0x60] sm:$0xff]  ;;  %v2866_v14 = vld [vmem:[%s2799_s3 + $0x68] sm:$0xff]  ;;  %vm453_vm0 = vcmp.lt.s32.totalorder %v452_v36, 96  ;;  %s2446_s27 = scalar_lea.vmem %s3486_s10, 2048  ;;  %s2531_s21 = smov [#allocation10]  }
  0x95   : > { %475 = vadd.xlane.f32.xlu0 %v2822_v2  ;;  %479 = vadd.xlane.f32.xlu1 %v2825_v3  ;;  %v2871_v15 = vld [vmem:[%s2799_s3 + $0x70] sm:$0xff]  ;;  %v2874_v16 = vld [vmem:[%s2799_s3 + $0x78] sm:$0xff]  ;;  %v710_v17 = vld [vmem:[#allocation5 + $0x8] sm:$0xff]  ;;  %v2880_v41 = vsel %vm453_vm0, 1.0, %v2530_v12  ;;  %p2447_p10 = scmp.ne.s32.totalorder %s3486_s10, %s2446_s27  ;;  %s2450_s28 = sshll.u32 %s2531_s21, 4  ;;  %s2451_s28 = int_to_ptr.vmem [resolvable:$false] %s2450_s28 }
  0x96   : > { %v712_v18 = vld [vmem:[#allocation5 + $0x18] sm:$0xff]  ;;  %v709_v19 = vld [vmem:[#allocation5] sm:$0xff]  ;;  %v711_v21 = vld [vmem:[#allocation5 + $0x10] sm:$0xff]  ;;  %s2452_s16 = scalar_lea.vmem %s2451_s28, 4096  ;;  %p2453_p12 = scmp.lt.s32.totalorder %s3486_s10, %s2451_s28 }
  0x97   : > { %v2008_v20 = vpack.c.bf16 %v712_v18, %v710_v17  ;;  %v714_v22 = vld [vmem:[#allocation5 + $0x28] sm:$0xff]  ;;  %v716_v23 = vld [vmem:[#allocation5 + $0x38] sm:$0xff]  ;;  %v2010_v24 = vpack.c.bf16 %v711_v21, %v709_v19  ;;  %v713_v26 = vld [vmem:[#allocation5 + $0x20] sm:$0xff]  ;;  %p2448_p3 = pnand %p2447_p10, %p2742_p5  ;;  %p2454_p2 = scmp.lt.s32.totalorder %s2452_s16, %s2446_s27 }
  0x98   : > { %v2012_v25 = vpack.c.bf16 %v716_v23, %v714_v22  ;;  %v715_v27 = vld [vmem:[#allocation5 + $0x30] sm:$0xff]  ;;  %v718_v28 = vld [vmem:[#allocation5 + $0x48] sm:$0xff]  ;;  %v720_v29 = vld [vmem:[#allocation5 + $0x58] sm:$0xff] }
  0x99   : > { %481 = vadd.xlane.f32.xlu0 %v2830_v4  ;;  %483 = vadd.xlane.f32.xlu1 %v2833_v5  ;;  %v2014_v30 = vpack.c.bf16 %v715_v27, %v713_v26  ;;  %v2016_v31 = vpack.c.bf16 %v720_v29, %v718_v28  ;;  %v717_v32 = vld [vmem:[#allocation5 + $0x40] sm:$0xff]  ;;  %v719_v33 = vld [vmem:[#allocation5 + $0x50] sm:$0xff]  ;;  %s3484_s12 = scalar_lea.hbm %s3573_s8, %s1839_s26  ;;  %p2449_p7 = pneg %p2448_p3 }
  0x9a   : > { %2009 = vmatprep.subr.bf16.mxu0 %v2008_v20  ;;  %v2018_v34 = vpack.c.bf16 %v719_v33, %v717_v32  ;;  %p2455_p1 = por %p2454_p2, %p2453_p12 }
  0x9b   : > { %2011 = vmatpush1.bf16.msra.mxu0 %v2010_v24 }
  0x9c   : > { %2013 = vmatprep.subr.bf16.mxu0 %v2012_v25  ;;  %p2456_p4 = pnand %p2455_p1, %p2449_p7 }
  0x9d   : > { %485 = vadd.xlane.f32.xlu0 %v2838_v6  ;;  %487 = vadd.xlane.f32.xlu1 %v2841_v7 }
  0x9f   : > { %2015 = vmatpush1.bf16.msra.mxu0 %v2014_v30 }
  0xa0   : > { %2017 = vmatprep.subr.bf16.mxu0 %v2016_v31 }
  0xa1   : > { %489 = vadd.xlane.f32.xlu0 %v2846_v8  ;;  %491 = vadd.xlane.f32.xlu1 %v2849_v9 }
  0xa3   : > { %2019 = vmatpush1.bf16.msra.mxu0 %v2018_v34 }
  0xa5   : > { %493 = vadd.xlane.f32.xlu0 %v2854_v10  ;;  %495 = vadd.xlane.f32.xlu1 %v2857_v11 }
  0xa9   : > { %497 = vadd.xlane.f32.xlu0 %v2863_v13  ;;  %499 = vadd.xlane.f32.xlu1 %v2866_v14 }
  0xad   : > { %501 = vadd.xlane.f32.xlu0 %v2871_v15  ;;  %503 = vadd.xlane.f32.xlu1 %v2874_v16 }
 0x11e   : > { %v474_v37 = vpop.xlane.xlu0 %473  ;;  %v478_v38 = vpop.xlane.xlu1 %477 }
 0x11f   : > { %v505_v39 = vmul.f32 0.010416667, %v474_v37  ;;  %v507_v40 = vmul.f32 0.010416667, %v478_v38  ;;  %v721_v37 = vld [vmem:[#allocation5 + $0x60] sm:$0xff]  ;;  %v723_v38 = vld [vmem:[#allocation5 + $0x70] sm:$0xff] }
 0x121   : > { %v521_v42 = vsub.f32 %v2814_v0, %v505_v39  ;;  %v523_v43 = vsub.f32 %v2817_v1, %v507_v40 }
 0x122   : > { %v476_v44 = vpop.xlane.xlu0 %475  ;;  %v480_v45 = vpop.xlane.xlu1 %479 }
 0x123   : > { %v506_v46 = vmul.f32 0.010416667, %v476_v44  ;;  %v508_v47 = vmul.f32 0.010416667, %v480_v45  ;;  %v2885_v48 = vmul.f32 %v521_v42, %v2880_v41  ;;  %v2888_v49 = vmul.f32 %v523_v43, %v2880_v41 }
 0x125   : > { %v522_v50 = vsub.f32 %v2822_v2, %v506_v46  ;;  %v524_v51 = vsub.f32 %v2825_v3, %v508_v47  ;;  %v553_v52 = vmul.f32 %v2885_v48, %v2885_v48  ;;  %v555_v55 = vmul.f32 %v2888_v49, %v2888_v49 }
 0x126   : > { %v482_v53 = vpop.xlane.xlu0 %481  ;;  %v484_v54 = vpop.xlane.xlu1 %483  ;;  %v2022_v46 = vpack.c.bf16 %v723_v38, %v721_v37  ;;  %v737_v38 = vld [vmem:[#allocation5 + $0xe0] sm:$0xff] }
 0x127   : > { %v509_v56 = vmul.f32 0.010416667, %v482_v53  ;;  %569 = vadd.xlane.f32.xlu0 %v553_v52  ;;  %v510_v57 = vmul.f32 0.010416667, %v484_v54  ;;  %v2897_v58 = vmul.f32 %v522_v50, %v2880_v41  ;;  %v2900_v59 = vmul.f32 %v524_v51, %v2880_v41  ;;  %v728_v52 = vld [vmem:[#allocation5 + $0x98] sm:$0xff] }
 0x129   : > { %v525_v60 = vsub.f32 %v2830_v4, %v509_v56  ;;  %v526_v61 = vsub.f32 %v2833_v5, %v510_v57  ;;  %v554_v62 = vmul.f32 %v2897_v58, %v2897_v58  ;;  %v556_v1 = vmul.f32 %v2900_v59, %v2900_v59  ;;  %v725_v56 = vld [vmem:[#allocation5 + $0x80] sm:$0xff]  ;;  %v727_v57 = vld [vmem:[#allocation5 + $0x90] sm:$0xff] }
 0x12a   : > { %v486_v63 = vpop.xlane.xlu0 %485  ;;  %v488_v0 = vpop.xlane.xlu1 %487 }
 0x12b   : > { %v511_v2 = vmul.f32 0.010416667, %v486_v63  ;;  %573 = vadd.xlane.f32.xlu0 %v555_v55  ;;  %571 = vadd.xlane.f32.xlu1 %v554_v62  ;;  %v512_v3 = vmul.f32 0.010416667, %v488_v0  ;;  %v2909_v17 = vmul.f32 %v525_v60, %v2880_v41  ;;  %v2912_v18 = vmul.f32 %v526_v61, %v2880_v41 }
 0x12c   : > { %v2026_v0 = vpack.c.bf16 %v727_v57, %v725_v56  ;;  %v1095_v56 = vld [vmem:[#allocation7 + $0xa8] sm:$0xff] }
 0x12d   : > { %v527_v4 = vsub.f32 %v2838_v6, %v511_v2  ;;  %v528_v5 = vsub.f32 %v2841_v7, %v512_v3  ;;  %v557_v19 = vmul.f32 %v2909_v17, %v2909_v17  ;;  %v558_v22 = vmul.f32 %v2912_v18, %v2912_v18  ;;  %v730_v3 = vld [vmem:[#allocation5 + $0xa8] sm:$0xff] }
 0x12e   : > { %v490_v20 = vpop.xlane.xlu0 %489  ;;  %v492_v21 = vpop.xlane.xlu1 %491 }
 0x12f   : > { %v513_v23 = vmul.f32 0.010416667, %v490_v20  ;;  %575 = vadd.xlane.f32.xlu1 %v556_v1  ;;  %577 = vadd.xlane.f32.xlu0 %v557_v19  ;;  %v514_v24 = vmul.f32 0.010416667, %v492_v21  ;;  %v2921_v25 = vmul.f32 %v527_v4, %v2880_v41  ;;  %v2924_v26 = vmul.f32 %v528_v5, %v2880_v41  ;;  %v732_v4 = vld [vmem:[#allocation5 + $0xb8] sm:$0xff]  ;;  %v729_v21 = vld [vmem:[#allocation5 + $0xa0] sm:$0xff] }
 0x131   : > { %v529_v6 = vsub.f32 %v2846_v8, %v513_v23  ;;  %v530_v7 = vsub.f32 %v2849_v9, %v514_v24  ;;  %v559_v27 = vmul.f32 %v2921_v25, %v2921_v25  ;;  %v560_v30 = vmul.f32 %v2924_v26, %v2924_v26  ;;  %v722_v8 = vld [vmem:[#allocation5 + $0x68] sm:$0xff]  ;;  %v724_v9 = vld [vmem:[#allocation5 + $0x78] sm:$0xff] }
 0x132   : > { %v494_v28 = vpop.xlane.xlu0 %493  ;;  %v496_v29 = vpop.xlane.xlu1 %495  ;;  %v2020_v36 = vpack.c.bf16 %v724_v9, %v722_v8  ;;  %v2028_v23 = vpack.c.bf16 %v732_v4, %v730_v3  ;;  %v738_v9 = vld [vmem:[#allocation5 + $0xe8] sm:$0xff] }
 0x133   : > { %v515_v31 = vmul.f32 0.010416667, %v494_v28  ;;  %579 = vadd.xlane.f32.xlu1 %v558_v22  ;;  %581 = vadd.xlane.f32.xlu0 %v559_v27  ;;  %v516_v32 = vmul.f32 0.010416667, %v496_v29  ;;  %v2933_v33 = vmul.f32 %v529_v6, %v2880_v41  ;;  %v2936_v34 = vmul.f32 %v530_v7, %v2880_v41  ;;  %v731_v22 = vld [vmem:[#allocation5 + $0xb0] sm:$0xff]  ;;  %v736_v27 = vld [vmem:[#allocation5 + $0xd8] sm:$0xff] }
 0x134   : > { %2021 = vmatprep.subr.bf16.mxu0 %v2020_v36  ;;  %v2030_v24 = vpack.c.bf16 %v731_v22, %v729_v21  ;;  %v740_v36 = vld [vmem:[#allocation5 + $0xf8] sm:$0xff] }
 0x135   : > { %v531_v39 = vsub.f32 %v2854_v10, %v515_v31  ;;  %v532_v40 = vsub.f32 %v2857_v11, %v516_v32  ;;  %v561_v42 = vmul.f32 %v2933_v33, %v2933_v33  ;;  %v562_v45 = vmul.f32 %v2936_v34, %v2936_v34  ;;  %2023 = vmatpush1.bf16.msra.mxu0 %v2022_v46  ;;  %v726_v11 = vld [vmem:[#allocation5 + $0x88] sm:$0xff]  ;;  %v735_v31 = vld [vmem:[#allocation5 + $0xd0] sm:$0xff] }
 0x136   : > { %v498_v43 = vpop.xlane.xlu0 %497  ;;  %v500_v44 = vpop.xlane.xlu1 %499  ;;  %v2024_v63 = vpack.c.bf16 %v728_v52, %v726_v11  ;;  %v2036_v37 = vpack.c.bf16 %v740_v36, %v738_v9  ;;  %v1075_v46 = vld [vmem:[#allocation7 + $0x8] sm:$0xff]  ;;  %v2981_v9 = vld [vmem:[%s3533_s1] ss:$0 sm:$0xff] }
 0x137   : > { %v517_v47 = vmul.f32 0.010416667, %v498_v43  ;;  %583 = vadd.xlane.f32.xlu1 %v560_v30  ;;  %585 = vadd.xlane.f32.xlu0 %v561_v42  ;;  %v518_v50 = vmul.f32 0.010416667, %v500_v44  ;;  %v2945_v51 = vmul.f32 %v531_v39, %v2880_v41  ;;  %v2948_v10 = vmul.f32 %v532_v40, %v2880_v41  ;;  %v733_v30 = vld [vmem:[#allocation5 + $0xc0] sm:$0xff]  ;;  %v739_v39 = vld [vmem:[#allocation5 + $0xf0] sm:$0xff] }
 0x138   : > { %2025 = vmatprep.subr.bf16.mxu0 %v2024_v63  ;;  %v2034_v32 = vpack.c.bf16 %v735_v31, %v733_v30  ;;  %v2038_v40 = vpack.c.bf16 %v739_v39, %v737_v38  ;;  %v1090_v42 = vld [vmem:[#allocation7 + $0x80] sm:$0xff]  ;;  %v1091_v43 = vld [vmem:[#allocation7 + $0x88] sm:$0xff] }
 0x139   : > { %v533_v53 = vsub.f32 %v2863_v13, %v517_v47  ;;  %v534_v54 = vsub.f32 %v2866_v14, %v518_v50  ;;  %v563_v55 = vmul.f32 %v2945_v51, %v2945_v51  ;;  %v564_v62 = vmul.f32 %v2948_v10, %v2948_v10  ;;  %2027 = vmatpush1.bf16.msra.mxu0 %v2026_v0  ;;  %v1074_v44 = vld [vmem:[#allocation7] sm:$0xff]  ;;  %v1092_v47 = vld [vmem:[#allocation7 + $0x90] sm:$0xff]  ;;  %v1093_v50 = vld [vmem:[#allocation7 + $0x98] sm:$0xff] }
 0x13a   : > { %v502_v60 = vpop.xlane.xlu0 %501  ;;  %v504_v61 = vpop.xlane.xlu1 %503  ;;  %2029 = vmatprep.subr.bf16.mxu0 %v2028_v23  ;;  %v2042_v11 = vpack.c.bf16 %v1075_v46, %v1074_v44  ;;  %v2044_v52 = vpack.c.bf16 %v1093_v50, %v1092_v47  ;;  %v2987_v38 = vld [vmem:[%s3534_s2] ss:$0 sm:$0xff] }
 0x13b   : > { %v519_v1 = vmul.f32 0.010416667, %v502_v60  ;;  %587 = vadd.xlane.f32.xlu1 %v562_v45  ;;  %589 = vadd.xlane.f32.xlu0 %v563_v55  ;;  %v520_v2 = vmul.f32 0.010416667, %v504_v61  ;;  %v2957_v13 = vmul.f32 %v533_v53, %v2880_v41  ;;  %v2960_v14 = vmul.f32 %v534_v54, %v2880_v41  ;;  %v1076_v53 = vld [vmem:[#allocation7 + $0x10] sm:$0xff]  ;;  %v1077_v54 = vld [vmem:[#allocation7 + $0x18] sm:$0xff] }
 0x13c   : > { %v2040_v45 = vpack.c.bf16 %v1091_v43, %v1090_v42  ;;  %v1094_v55 = vld [vmem:[#allocation7 + $0xa0] sm:$0xff]  ;;  %v2046_v57 = vpack.c.bf16 %v1077_v54, %v1076_v53 }
 0x13d   : > { %v535_v5 = vsub.f32 %v2871_v15, %v519_v1  ;;  %v536_v19 = vsub.f32 %v2874_v16, %v520_v2  ;;  %v565_v20 = vmul.f32 %v2957_v13, %v2957_v13  ;;  %v566_v6 = vmul.f32 %v2960_v14, %v2960_v14  ;;  %v734_v16 = vld [vmem:[#allocation5 + $0xc8] sm:$0xff]  ;;  %2031 = vmatpush1.bf16.msra.mxu0 %v2030_v24  ;;  %v1078_v61 = vld [vmem:[#allocation7 + $0x20] sm:$0xff] }
 0x13e   : > { %v2032_v29 = vpack.c.bf16 %v736_v27, %v734_v16  ;;  %2041 = vmatprep.subr.bf16.mxu1 %v2040_v45  ;;  %v2048_v60 = vpack.c.bf16 %v1095_v56, %v1094_v55 }
 0x13f   : > { %591 = vadd.xlane.f32.xlu1 %v564_v62  ;;  %593 = vadd.xlane.f32.xlu0 %v565_v20  ;;  %v2969_v7 = vmul.f32 %v535_v5, %v2880_v41  ;;  %v2972_v15 = vmul.f32 %v536_v19, %v2880_v41  ;;  %v1079_v62 = vld [vmem:[#allocation7 + $0x28] sm:$0xff] }
 0x140   : > { %2033 = vmatprep.subr.bf16.mxu0 %v2032_v29  ;;  %2043 = vmatpush3.bf16.msra.mxu1 %v2042_v11  ;;  %v2050_v63 = vpack.c.bf16 %v1079_v62, %v1078_v61 }
 0x141   : > { %v567_v28 = vmul.f32 %v2969_v7, %v2969_v7  ;;  %v568_v8 = vmul.f32 %v2972_v15, %v2972_v15  ;;  %2035 = vmatpush1.bf16.msra.mxu0 %v2034_v32  ;;  %2045 = vmatprep.subr.bf16.mxu1 %v2044_v52 }
 0x142   : > { %2037 = vmatprep.subr.bf16.mxu0 %v2036_v37 }
 0x143   : > { %595 = vadd.xlane.f32.xlu1 %v566_v6  ;;  %597 = vadd.xlane.f32.xlu0 %v567_v28 }
 0x144   : > { %2047 = vmatpush3.bf16.msra.mxu1 %v2046_v57 }
 0x145   : > { %2039 = vmatpush1.bf16.msra.mxu0 %v2038_v40  ;;  %2049 = vmatprep.subr.bf16.mxu1 %v2048_v60 }
 0x147   : > { %599 = vadd.xlane.f32.xlu1 %v568_v8 }
 0x148   : > { %2051 = vmatpush3.bf16.msra.mxu1 %v2050_v63 }
 0x1b4   : > { %v570_v0 = vpop.xlane.xlu0 %569 }
 0x1b5   : > { %v601_v1 = vmul.f32 0.010416667, %v570_v0 }
 0x1b7   : > { %v617_v2 = vadd.f32 1e-05, %v601_v1 }
 0x1b8   : > { %v572_v3 = vpop.xlane.xlu1 %571  ;;  %v574_v4 = vpop.xlane.xlu0 %573 }
 0x1b9   : > { %2204 = vrsqrt.f32 %v617_v2  ;;  %v602_v5 = vmul.f32 0.010416667, %v572_v3  ;;  %v603_v19 = vmul.f32 0.010416667, %v574_v4 }
 0x1bb   : > { %v618_v20 = vadd.f32 1e-05, %v602_v5  ;;  %v619_v21 = vadd.f32 1e-05, %v603_v19 }
 0x1bc   : > { %v576_v22 = vpop.xlane.xlu1 %575  ;;  %v578_v23 = vpop.xlane.xlu0 %577 }
 0x1bd   : > { %2206 = vrsqrt.f32 %v618_v20  ;;  %v604_v24 = vmul.f32 0.010416667, %v576_v22  ;;  %v605_v6 = vmul.f32 0.010416667, %v578_v23 }
 0x1be   : > { %2208 = vrsqrt.f32 %v619_v21 }
 0x1bf   : > { %v620_v16 = vadd.f32 1e-05, %v604_v24  ;;  %v621_v27 = vadd.f32 1e-05, %v605_v6 }
 0x1c0   : > { %v580_v28 = vpop.xlane.xlu1 %579  ;;  %v582_v29 = vpop.xlane.xlu0 %581 }
 0x1c1   : > { %2210 = vrsqrt.f32 %v620_v16  ;;  %v606_v30 = vmul.f32 0.010416667, %v580_v28  ;;  %v607_v8 = vmul.f32 0.010416667, %v582_v29 }
 0x1c2   : > { %2212 = vrsqrt.f32 %v621_v27 }
 0x1c3   : > { %v2205_v31 = vpop.eup %2204  ;;  %v622_v32 = vadd.f32 1e-05, %v606_v30  ;;  %v623_v42 = vadd.f32 1e-05, %v607_v8 }
 0x1c4   : > { %v584_v36 = vpop.xlane.xlu1 %583  ;;  %v649_v37 = vmul.f32 %v2205_v31, %v2885_v48  ;;  %v586_v45 = vpop.xlane.xlu0 %585 }
 0x1c5   : > { %2214 = vrsqrt.f32 %v622_v32  ;;  %v608_v43 = vmul.f32 0.010416667, %v584_v36  ;;  %v609_v53 = vmul.f32 0.010416667, %v586_v45 }
 0x1c6   : > { %v671_v39 = vmul.f32 %v2981_v9, %v649_v37  ;;  %2216 = vrsqrt.f32 %v623_v42 }
 0x1c7   : > { %v2207_v40 = vpop.eup %2206  ;;  %v624_v52 = vadd.f32 1e-05, %v608_v43 }
 0x1c8   : > { %v2209_v44 = vpop.eup %2208  ;;  %v2991_v46 = vadd.f32 %v2987_v38, %v671_v39  ;;  %v650_v47 = vmul.f32 %v2207_v40, %v2897_v58  ;;  %v588_v54 = vpop.xlane.xlu1 %587 }
 0x1c9   : > { %v651_v48 = vmul.f32 %v2209_v44, %v2888_v49  ;;  %2218 = vrsqrt.f32 %v624_v52  ;;  %v625_v49 = vadd.f32 1e-05, %v609_v53  ;;  %v610_v60 = vmul.f32 0.010416667, %v588_v54  ;;  %v590_v61 = vpop.xlane.xlu0 %589 }
 0x1ca   : > { %818 = vmatmul.mubr.f32.vlgmr.msra.gmra.mrb[0].mxu0 %v2991_v46  ;;  %v672_v50 = vmul.f32 %v2981_v9, %v650_v47  ;;  %v611_v2 = vmul.f32 0.010416667, %v590_v61 }
 0x1cb   : > { %v2211_v11 = vpop.eup %2210  ;;  %823 = vmatprep.mubr.f32.mxu0 %v2530_v12  ;;  %v673_v56 = vmul.f32 %v2981_v9, %v651_v48  ;;  %2220 = vrsqrt.f32 %v625_v49 }
 0x1cc   : > { %v2999_v55 = vadd.f32 %v2987_v38, %v672_v50  ;;  %v652_v58 = vmul.f32 %v2211_v11, %v2900_v59  ;;  %v2213_v57 = vpop.eup %2212  ;;  %v626_v59 = vadd.f32 1e-05, %v610_v60  ;;  %v592_v3 = vpop.xlane.xlu1 %591 }
 0x1cd   : > { %v3006_v62 = vadd.f32 %v2987_v38, %v673_v56  ;;  %v653_v0 = vmul.f32 %v2213_v57, %v2909_v17  ;;  %v627_v17 = vadd.f32 1e-05, %v611_v2  ;;  %v612_v21 = vmul.f32 0.010416667, %v592_v3  ;;  %v594_v22 = vpop.xlane.xlu0 %593 }
 0x1ce   : > { %824 = vmatmul.mubr.f32.gmra.mrb[2].mxu0 %v2999_v55  ;;  %v674_v63 = vmul.f32 %v2981_v9, %v652_v58  ;;  %2222 = vrsqrt.f32 %v626_v59  ;;  %v613_v27 = vmul.f32 0.010416667, %v594_v22 }
 0x1cf   : > { %829 = vmatprep.mubr.f32.mxu0 %v2530_v12  ;;  %v2215_v1 = vpop.eup %2214  ;;  %v675_v5 = vmul.f32 %v2981_v9, %v653_v0  ;;  %2224 = vrsqrt.f32 %v627_v17 }
 0x1d0   : > { %v3013_v4 = vadd.f32 %v2987_v38, %v674_v63  ;;  %v654_v19 = vmul.f32 %v2215_v1, %v2912_v18  ;;  %v2217_v20 = vpop.eup %2216  ;;  %v628_v18 = vadd.f32 1e-05, %v612_v21  ;;  %v596_v28 = vpop.xlane.xlu1 %595 }
 0x1d1   : > { %v3020_v23 = vadd.f32 %v2987_v38, %v675_v5  ;;  %v655_v6 = vmul.f32 %v2217_v20, %v2921_v25  ;;  %v629_v25 = vadd.f32 1e-05, %v613_v27  ;;  %v614_v8 = vmul.f32 0.010416667, %v596_v28  ;;  %v598_v36 = vpop.xlane.xlu0 %597  ;;  %v1098_v28 = vld [vmem:[#allocation7 + $0xc0] sm:$0xff] }
 0x1d2   : > { %830 = vmatmul.mubr.f32.gmra.mrb[4].mxu0 %v3006_v62  ;;  %v676_v24 = vmul.f32 %v2981_v9, %v654_v19  ;;  %2226 = vrsqrt.f32 %v628_v18  ;;  %v615_v43 = vmul.f32 0.010416667, %v598_v36  ;;  %v1081_v18 = vld [vmem:[#allocation7 + $0x38] sm:$0xff]  ;;  %v1084_v36 = vld [vmem:[#allocation7 + $0x50] sm:$0xff] }
 0x1d3   : > { %835 = vmatprep.mubr.f32.mxu0 %v2530_v12  ;;  %v2219_v16 = vpop.eup %2218  ;;  %v677_v30 = vmul.f32 %v2981_v9, %v655_v6  ;;  %2228 = vrsqrt.f32 %v629_v25 }
 0x1d4   : > { %v3027_v29 = vadd.f32 %v2987_v38, %v676_v24  ;;  %v656_v31 = vmul.f32 %v2219_v16, %v2924_v26  ;;  %v630_v26 = vadd.f32 1e-05, %v614_v8  ;;  %v600_v44 = vpop.xlane.xlu1 %599  ;;  %v1096_v24 = vld [vmem:[#allocation7 + $0xb0] sm:$0xff] }
 0x1d5   : > { %v2221_v32 = vpop.eup %2220  ;;  %v3034_v37 = vadd.f32 %v2987_v38, %v677_v30  ;;  %v616_v11 = vmul.f32 0.010416667, %v600_v44  ;;  %v1080_v16 = vld [vmem:[#allocation7 + $0x30] sm:$0xff]  ;;  %v1099_v30 = vld [vmem:[#allocation7 + $0xc8] sm:$0xff]  ;;  %v1086_v44 = vld [vmem:[#allocation7 + $0x60] sm:$0xff] }
 0x1d6   : > { %836 = vmatmul.mubr.f32.gmra.mrb[6].mxu0 %v3013_v4  ;;  %v678_v39 = vmul.f32 %v2981_v9, %v656_v31  ;;  %v657_v40 = vmul.f32 %v2221_v32, %v2933_v33  ;;  %2230 = vrsqrt.f32 %v630_v26  ;;  %v631_v33 = vadd.f32 1e-05, %v615_v43  ;;  %v1082_v31 = vld [vmem:[#allocation7 + $0x40] sm:$0xff]  ;;  %v1083_v32 = vld [vmem:[#allocation7 + $0x48] sm:$0xff] }
 0x1d7   : > { %841 = vmatprep.mubr.f32.mxu0 %v2530_v12  ;;  %v2054_v27 = vpack.c.bf16 %v1081_v18, %v1080_v16  ;;  %v2058_v25 = vpack.c.bf16 %v1083_v32, %v1082_v31  ;;  %v1103_v26 = vld [vmem:[#allocation7 + $0xe8] sm:$0xff] }
 0x1d8   : > { %v2223_v42 = vpop.eup %2222  ;;  %v3041_v45 = vadd.f32 %v2987_v38, %v678_v39  ;;  %v679_v47 = vmul.f32 %v2981_v9, %v657_v40  ;;  %2232 = vrsqrt.f32 %v631_v33  ;;  %v1085_v39 = vld [vmem:[#allocation7 + $0x58] sm:$0xff] }
 0x1d9   : > { %v658_v48 = vmul.f32 %v2223_v42, %v2936_v34  ;;  %v2225_v50 = vpop.eup %2224  ;;  %v632_v34 = vadd.f32 1e-05, %v616_v11  ;;  %v2062_v40 = vpack.c.bf16 %v1085_v39, %v1084_v36  ;;  %v1102_v42 = vld [vmem:[#allocation7 + $0xe0] sm:$0xff]  ;;  %v1105_v33 = vld [vmem:[#allocation7 + $0xf8] sm:$0xff] }
 0x1da   : > { %842 = vmatmul.mubr.f32.gmra.mrb[8].mxu0 %v3020_v23  ;;  %v3048_v52 = vadd.f32 %v2987_v38, %v679_v47  ;;  %v659_v54 = vmul.f32 %v2225_v50, %v2945_v51  ;;  %v2064_v43 = vpack.c.bf16 %v1103_v26, %v1102_v42  ;;  %v1087_v47 = vld [vmem:[#allocation7 + $0x68] sm:$0xff]  ;;  %v1104_v50 = vld [vmem:[#allocation7 + $0xf0] sm:$0xff] }
 0x1db   : > { %847 = vmatprep.mubr.f32.mxu0 %v2530_v12  ;;  %v680_v53 = vmul.f32 %v2981_v9, %v658_v48  ;;  %2234 = vrsqrt.f32 %v632_v34  ;;  %v2066_v48 = vpack.c.bf16 %v1087_v47, %v1086_v44  ;;  %v2068_v11 = vpack.c.bf16 %v1105_v33, %v1104_v50 }
 0x1dc   : > { %v2227_v56 = vpop.eup %2226  ;;  %v681_v57 = vmul.f32 %v2981_v9, %v659_v54  ;;  %v1089_v54 = vld [vmem:[#allocation7 + $0x78] sm:$0xff]  ;;  %v744_v34 = vshrl.u32 %v451_v35, 7 }
 0x1dd   : > { %v3055_v58 = vadd.f32 %v2987_v38, %v680_v53  ;;  %v660_v49 = vmul.f32 %v2227_v56, %v2948_v10  ;;  %v2229_v60 = vpop.eup %2228  ;;  %v1088_v53 = vld [vmem:[#allocation7 + $0x70] sm:$0xff] }
 0x1de   : > { %848 = vmatmul.mubr.f32.gmra.mrb[10].mxu0 %v3027_v29  ;;  %v3062_v51 = vadd.f32 %v2987_v38, %v681_v57  ;;  %v661_v63 = vmul.f32 %v2229_v60, %v2957_v13  ;;  %v2070_v56 = vpack.c.bf16 %v1089_v54, %v1088_v53  ;;  %v745_v57 = vsub.s32 0, %v744_v34 }
 0x1df   : > { %853 = vmatprep.mubr.f32.mxu0 %v2530_v12  ;;  %v682_v61 = vmul.f32 %v2981_v9, %v660_v49  ;;  %v741_v49 = vld [vmem:[%s3536_s4] sm:$0x3]  ;;  %v749_v60 = vsub.s32 1, %v744_v34 }
 0x1e0   : > { %v2231_v0 = vpop.eup %2230  ;;  %v683_v1 = vmul.f32 %v2981_v9, %v661_v63 }
 0x1e1   : > { %v3069_v10 = vadd.f32 %v2987_v38, %v682_v61  ;;  %v662_v59 = vmul.f32 %v2231_v0, %v2960_v14  ;;  %v3103_v61 = vrot.slane %v741_v49, %v745_v57  ;;  %v3105_v63 = vrot.slane %v741_v49, %v749_v60 }
 0x1e2   : > { %854 = vmatmul.mubr.f32.gmra.mrb[12].mxu0 %v3034_v37  ;;  %v2233_v2 = vpop.eup %2232  ;;  %v3076_v3 = vadd.f32 %v2987_v38, %v683_v1 }
 0x1e3   : > { %859 = vmatprep.mubr.f32.mxu0 %v2530_v12  ;;  %v684_v13 = vmul.f32 %v2981_v9, %v662_v59  ;;  %v663_v5 = vmul.f32 %v2233_v2, %v2969_v7 }
 0x1e5   : > { %v2235_v19 = vpop.eup %2234  ;;  %v3083_v20 = vadd.f32 %v2987_v38, %v684_v13  ;;  %v685_v14 = vmul.f32 %v2981_v9, %v663_v5 }
 0x1e6   : > { %860 = vmatmul.mubr.f32.gmra.mrb[14].mxu0 %v3041_v45  ;;  %v664_v17 = vmul.f32 %v2235_v19, %v2972_v15  ;;  %v1097_v15 = vld [vmem:[#allocation7 + $0xb8] sm:$0xff] }
 0x1e7   : > { %865 = vmatprep.mubr.f32.mxu0 %v2530_v12  ;;  %v3090_v21 = vadd.f32 %v2987_v38, %v685_v14  ;;  %v2052_v6 = vpack.c.bf16 %v1097_v15, %v1096_v24 }
 0x1e8   : > { %v686_v7 = vmul.f32 %v2981_v9, %v664_v17  ;;  %v2056_v9 = vpack.c.bf16 %v1099_v30, %v1098_v28 }
 0x1e9   : > { %2053 = vmatprep.subr.bf16.mxu1 %v2052_v6 }
 0x1ea   : > { %866 = vmatmul.mubr.f32.gmra.mrb[16].mxu0 %v3048_v52  ;;  %v3096_v22 = vadd.f32 %v2987_v38, %v686_v7  ;;  %2055 = vmatpush3.bf16.msra.mxu1 %v2054_v27  ;;  %v1101_v38 = vld [vmem:[#allocation7 + $0xd8] sm:$0xff] }
 0x1eb   : > { %871 = vmatprep.mubr.f32.mxu0 %v2530_v12  ;;  %2057 = vmatprep.subr.bf16.mxu1 %v2056_v9 }
 0x1ee   : > { %872 = vmatmul.mubr.f32.gmra.mrb[18].mxu0 %v3055_v58  ;;  %2059 = vmatpush3.bf16.msra.mxu1 %v2058_v25 }
 0x1ef   : > { %877 = vmatprep.mubr.f32.mxu0 %v2530_v12 }
 0x1f2   : > { %878 = vmatmul.mubr.f32.gmra.mrb[20].mxu0 %v3062_v51 }
 0x1f3   : > { %883 = vmatprep.mubr.f32.mxu0 %v2530_v12 }
 0x1f6   : > { %884 = vmatmul.mubr.f32.gmra.mrb[22].mxu0 %v3069_v10 }
 0x1f7   : > { %889 = vmatprep.mubr.f32.mxu0 %v2530_v12 }
 0x1fa   : > { %890 = vmatmul.mubr.f32.gmra.mrb[24].mxu0 %v3076_v3 }
 0x1fb   : > { %895 = vmatprep.mubr.f32.mxu0 %v2530_v12 }
 0x1fe   : > { %896 = vmatmul.mubr.f32.gmra.mrb[26].mxu0 %v3083_v20 }
 0x1ff   : > { %901 = vmatprep.mubr.f32.mxu0 %v2530_v12 }
 0x202   : > { %902 = vmatmul.mubr.f32.gmra.mrb[28].mxu0 %v3090_v21 }
 0x203   : > { %907 = vmatprep.mubr.f32.mxu0 %v2530_v12  ;;  %v1100_v12 = vld [vmem:[#allocation7 + $0xd0] sm:$0xff] }
 0x204   : > { %v2060_v8 = vpack.c.bf16 %v1101_v38, %v1100_v12 }
 0x206   : > { %908 = vmatmul.mubr.f32.gmra.mrb[30].mxu0 %v3096_v22  ;;  %2061 = vmatprep.subr.bf16.mxu1 %v2060_v8 }
 0x207   : > { %2063 = vmatpush3.bf16.msra.mxu1 %v2062_v40 }
 0x208   : > { %2065 = vmatprep.subr.bf16.mxu1 %v2064_v43 }
 0x20b   : > { %2067 = vmatpush3.bf16.msra.mxu1 %v2066_v48 }
 0x20c   : > { %2069 = vmatprep.subr.bf16.mxu1 %v2068_v11 }
 0x20f   : > { %2071 = vmatpush3.bf16.msra.mxu1 %v2070_v56 }
 0x29d   : > { %v819_v0 = vpop.f32.mrb[0].mxu0 }
 0x29e   : > { %v820_v1 = vadd.f32 %v819_v0, %v3103_v61  ;;  %v821_v59 = vpop.f32.mrb[1].mxu0 }
 0x29f   : > { %v822_v2 = vadd.f32 %v821_v59, %v3105_v63 }
 0x2a0   : > { %v946_v13 = vmul.f32 0.70710677, %v820_v1  ;;  %v914_v44 = vmul.f32 0.5, %v820_v1 }
 0x2a1   : > { %v947_v5 = vmul.f32 0.70710677, %v822_v2  ;;  %v825_v19 = vpop.f32.mrb[2].mxu0  ;;  %v915_v26 = vmul.f32 0.5, %v822_v2 }
 0x2a2   : > { %2236 = verf.f32 %v946_v13  ;;  %v826_v35 = vadd.f32 %v825_v19, %v3103_v61  ;;  %v827_v14 = vpop.f32.mrb[3].mxu0 }
 0x2a3   : > { %2238 = verf.f32 %v947_v5  ;;  %v828_v17 = vadd.f32 %v827_v14, %v3105_v63 }
 0x2a4   : > { %v948_v7 = vmul.f32 0.70710677, %v826_v35  ;;  %v916_v1 = vmul.f32 0.5, %v826_v35 }
 0x2a5   : > { %v949_v24 = vmul.f32 0.70710677, %v828_v17  ;;  %v831_v15 = vpop.f32.mrb[4].mxu0  ;;  %v917_v57 = vmul.f32 0.5, %v828_v17 }
 0x2a6   : > { %2240 = verf.f32 %v948_v7  ;;  %v832_v6 = vadd.f32 %v831_v15, %v3103_v61  ;;  %v833_v16 = vpop.f32.mrb[5].mxu0 }
 0x2a7   : > { %2242 = verf.f32 %v949_v24  ;;  %v834_v18 = vadd.f32 %v833_v16, %v3105_v63 }
 0x2a8   : > { %v950_v27 = vmul.f32 0.70710677, %v832_v6 }
 0x2a9   : > { %v951_v28 = vmul.f32 0.70710677, %v834_v18  ;;  %v837_v30 = vpop.f32.mrb[6].mxu0  ;;  %v919_v15 = vmul.f32 0.5, %v834_v18 }
 0x2aa   : > { %2244 = verf.f32 %v950_v27  ;;  %v3114_v9 = vadd.f32 %v837_v30, %v3103_v61  ;;  %v839_v31 = vpop.f32.mrb[7].mxu0 }
 0x2ab   : > { %2246 = verf.f32 %v951_v28  ;;  %v840_v32 = vadd.f32 %v839_v31, %v3105_v63  ;;  %v918_v28 = vmul.f32 0.5, %v832_v6 }
 0x2ac   : > { %v2237_v25 = vpop.eup %2236  ;;  %v952_v12 = vmul.f32 0.70710677, %v3114_v9 }
 0x2ad   : > { %v2239_v38 = vpop.eup %2238  ;;  %v1010_v8 = vadd.f32 1.0, %v2237_v25  ;;  %v953_v36 = vmul.f32 0.70710677, %v840_v32  ;;  %v843_v39 = vpop.f32.mrb[8].mxu0 }
 0x2ae   : > { %2248 = verf.f32 %v952_v12  ;;  %v3119_v40 = vadd.f32 %v843_v39, %v3103_v61  ;;  %v845_v42 = vpop.f32.mrb[9].mxu0  ;;  %v1011_v43 = vadd.f32 1.0, %v2239_v38 }
 0x2af   : > { %2250 = verf.f32 %v953_v36  ;;  %v3122_v47 = vadd.f32 %v845_v42, %v3105_v63  ;;  %v1042_v34 = vmul.f32 %v1010_v8, %v914_v44  ;;  %v921_v42 = vmul.f32 0.5, %v840_v32 }
 0x2b0   : > { %v2241_v48 = vpop.eup %2240  ;;  %v954_v50 = vmul.f32 0.70710677, %v3119_v40  ;;  %v1043_v33 = vmul.f32 %v1011_v43, %v915_v26  ;;  %v920_v44 = vmul.f32 0.5, %v3114_v9 }
 0x2b1   : > { %v2243_v11 = vpop.eup %2242  ;;  %v1012_v53 = vadd.f32 1.0, %v2241_v48  ;;  %v955_v54 = vmul.f32 0.70710677, %v3122_v47  ;;  %v849_v56 = vpop.f32.mrb[10].mxu0 }
 0x2b2   : > { %v1013_v49 = vadd.f32 1.0, %v2243_v11  ;;  %2252 = verf.f32 %v954_v50  ;;  %v3127_v60 = vadd.f32 %v849_v56, %v3103_v61  ;;  %v851_v0 = vpop.f32.mrb[11].mxu0  ;;  %1177 = vmatprep.mubr.f32.mxu1 %v1043_v33 }
 0x2b3   : > { %2254 = verf.f32 %v955_v54  ;;  %v3130_v59 = vadd.f32 %v851_v0, %v3105_v63  ;;  %1178 = vmatmul.mubr.f32.vlgmr.msra.gmra.mrb[0].mxu1 %v1042_v34  ;;  %v1044_v24 = vmul.f32 %v1012_v53, %v916_v1  ;;  %v922_v1 = vmul.f32 0.5, %v3119_v40 }
 0x2b4   : > { %v2245_v2 = vpop.eup %2244  ;;  %v956_v13 = vmul.f32 0.70710677, %v3127_v60  ;;  %v1045_v5 = vmul.f32 %v1013_v49, %v917_v57  ;;  %v923_v57 = vmul.f32 0.5, %v3122_v47 }
 0x2b5   : > { %v2247_v19 = vpop.eup %2246  ;;  %v1014_v14 = vadd.f32 1.0, %v2245_v2  ;;  %v957_v17 = vmul.f32 0.70710677, %v3130_v59  ;;  %v855_v7 = vpop.f32.mrb[12].mxu0 }
 0x2b6   : > { %v1015_v16 = vadd.f32 1.0, %v2247_v19  ;;  %2256 = verf.f32 %v956_v13  ;;  %v3135_v35 = vadd.f32 %v855_v7, %v3103_v61  ;;  %v857_v27 = vpop.f32.mrb[13].mxu0  ;;  %1182 = vmatprep.mubr.f32.mxu1 %v1045_v5 }
 0x2b7   : > { %2258 = verf.f32 %v957_v17  ;;  %v3138_v30 = vadd.f32 %v857_v27, %v3105_v63  ;;  %1183 = vmatmul.mubr.f32.gmra.mrb[2].mxu1 %v1044_v24  ;;  %v1046_v39 = vmul.f32 %v1014_v14, %v918_v28  ;;  %v924_v28 = vmul.f32 0.5, %v3127_v60 }
 0x2b8   : > { %v2249_v31 = vpop.eup %2248  ;;  %v958_v25 = vmul.f32 0.70710677, %v3135_v35  ;;  %v1047_v12 = vmul.f32 %v1015_v16, %v919_v15  ;;  %v925_v15 = vmul.f32 0.5, %v3130_v59 }
 0x2b9   : > { %v2251_v38 = vpop.eup %2250  ;;  %v1016_v8 = vadd.f32 1.0, %v2249_v31  ;;  %v959_v18 = vmul.f32 0.70710677, %v3138_v30  ;;  %v861_v36 = vpop.f32.mrb[14].mxu0 }
 0x2ba   : > { %v1017_v26 = vadd.f32 1.0, %v2251_v38  ;;  %2260 = verf.f32 %v958_v25  ;;  %v3143_v6 = vadd.f32 %v861_v36, %v3103_v61  ;;  %v863_v43 = vpop.f32.mrb[15].mxu0  ;;  %1187 = vmatprep.mubr.f32.mxu1 %v1047_v12 }
 0x2bb   : > { %2262 = verf.f32 %v959_v18  ;;  %v3147_v48 = vadd.f32 %v863_v43, %v3105_v63  ;;  %1188 = vmatmul.mubr.f32.gmra.mrb[4].mxu1 %v1046_v39  ;;  %v1048_v34 = vmul.f32 %v1016_v8, %v920_v44  ;;  %v926_v44 = vmul.f32 0.5, %v3135_v35 }
 0x2bc   : > { %v2253_v50 = vpop.eup %2252  ;;  %v960_v33 = vmul.f32 0.70710677, %v3143_v6  ;;  %v1049_v11 = vmul.f32 %v1017_v26, %v921_v42  ;;  %v927_v42 = vmul.f32 0.5, %v3138_v30 }
 0x2bd   : > { %v2255_v53 = vpop.eup %2254  ;;  %v1018_v32 = vadd.f32 1.0, %v2253_v50  ;;  %v961_v54 = vmul.f32 0.70710677, %v3147_v48  ;;  %v867_v56 = vpop.f32.mrb[16].mxu0 }
 0x2be   : > { %v1019_v49 = vadd.f32 1.0, %v2255_v53  ;;  %2264 = verf.f32 %v960_v33  ;;  %v3153_v9 = vadd.f32 %v867_v56, %v3103_v61  ;;  %v869_v0 = vpop.f32.mrb[17].mxu0  ;;  %1192 = vmatprep.mubr.f32.mxu1 %v1049_v11 }
 0x2bf   : > { %2266 = verf.f32 %v961_v54  ;;  %v3157_v2 = vadd.f32 %v869_v0, %v3105_v63  ;;  %1193 = vmatmul.mubr.f32.gmra.mrb[6].mxu1 %v1048_v34  ;;  %v1050_v24 = vmul.f32 %v1018_v32, %v922_v1  ;;  %v928_v1 = vmul.f32 0.5, %v3143_v6 }
 0x2c0   : > { %v2257_v13 = vpop.eup %2256  ;;  %v962_v5 = vmul.f32 0.70710677, %v3153_v9  ;;  %v1051_v19 = vmul.f32 %v1019_v49, %v923_v57  ;;  %v929_v57 = vmul.f32 0.5, %v3147_v48 }
 0x2c1   : > { %v2259_v14 = vpop.eup %2258  ;;  %v1020_v47 = vadd.f32 1.0, %v2257_v13  ;;  %v963_v17 = vmul.f32 0.70710677, %v3157_v2  ;;  %v873_v7 = vpop.f32.mrb[18].mxu0 }
 0x2c2   : > { %v1021_v16 = vadd.f32 1.0, %v2259_v14  ;;  %2268 = verf.f32 %v962_v5  ;;  %v3163_v40 = vadd.f32 %v873_v7, %v3103_v61  ;;  %v875_v27 = vpop.f32.mrb[19].mxu0  ;;  %1197 = vmatprep.mubr.f32.mxu1 %v1051_v19 }
 0x2c3   : > { %2270 = verf.f32 %v963_v17  ;;  %v3167_v31 = vadd.f32 %v875_v27, %v3105_v63  ;;  %1198 = vmatmul.mubr.f32.gmra.mrb[8].mxu1 %v1050_v24  ;;  %v1052_v39 = vmul.f32 %v1020_v47, %v924_v28  ;;  %v930_v28 = vmul.f32 0.5, %v3153_v9 }
 0x2c4   : > { %v2261_v25 = vpop.eup %2260  ;;  %v964_v12 = vmul.f32 0.70710677, %v3163_v40  ;;  %v1053_v38 = vmul.f32 %v1021_v16, %v925_v15  ;;  %v931_v15 = vmul.f32 0.5, %v3157_v2 }
 0x2c5   : > { %v2263_v8 = vpop.eup %2262  ;;  %v1022_v59 = vadd.f32 1.0, %v2261_v25  ;;  %v965_v18 = vmul.f32 0.70710677, %v3167_v31  ;;  %v879_v36 = vpop.f32.mrb[20].mxu0 }
 0x2c6   : > { %v1023_v26 = vadd.f32 1.0, %v2263_v8  ;;  %2272 = verf.f32 %v964_v12  ;;  %v3173_v60 = vadd.f32 %v879_v36, %v3103_v61  ;;  %v881_v43 = vpop.f32.mrb[21].mxu0  ;;  %1202 = vmatprep.mubr.f32.mxu1 %v1053_v38 }
 0x2c7   : > { %2274 = verf.f32 %v965_v18  ;;  %v3177_v50 = vadd.f32 %v881_v43, %v3105_v63  ;;  %1203 = vmatmul.mubr.f32.gmra.mrb[10].mxu1 %v1052_v39  ;;  %v1054_v34 = vmul.f32 %v1022_v59, %v926_v44  ;;  %v932_v44 = vmul.f32 0.5, %v3163_v40 }
 0x2c8   : > { %v2265_v33 = vpop.eup %2264  ;;  %v966_v11 = vmul.f32 0.70710677, %v3173_v60  ;;  %v1055_v53 = vmul.f32 %v1023_v26, %v927_v42  ;;  %v933_v42 = vmul.f32 0.5, %v3167_v31 }
 0x2c9   : > { %v2267_v32 = vpop.eup %2266  ;;  %v1024_v30 = vadd.f32 1.0, %v2265_v33  ;;  %v967_v54 = vmul.f32 0.70710677, %v3177_v50  ;;  %v885_v56 = vpop.f32.mrb[22].mxu0 }
 0x2ca   : > { %v1025_v49 = vadd.f32 1.0, %v2267_v32  ;;  %2276 = verf.f32 %v966_v11  ;;  %v3183_v35 = vadd.f32 %v885_v56, %v3103_v61  ;;  %v887_v0 = vpop.f32.mrb[23].mxu0  ;;  %1207 = vmatprep.mubr.f32.mxu1 %v1055_v53 }
 0x2cb   : > { %2278 = verf.f32 %v967_v54  ;;  %v3187_v13 = vadd.f32 %v887_v0, %v3105_v63  ;;  %1208 = vmatmul.mubr.f32.gmra.mrb[12].mxu1 %v1054_v34  ;;  %v1056_v24 = vmul.f32 %v1024_v30, %v928_v1  ;;  %v934_v1 = vmul.f32 0.5, %v3173_v60 }
 0x2cc   : > { %v2269_v5 = vpop.eup %2268  ;;  %v968_v19 = vmul.f32 0.70710677, %v3183_v35  ;;  %v1057_v14 = vmul.f32 %v1025_v49, %v929_v57  ;;  %v935_v57 = vmul.f32 0.5, %v3177_v50  ;;  %v936_v60 = vmul.f32 0.5, %v3183_v35 }
 0x2cd   : > { %v2271_v47 = vpop.eup %2270  ;;  %v1026_v48 = vadd.f32 1.0, %v2269_v5  ;;  %v969_v17 = vmul.f32 0.70710677, %v3187_v13  ;;  %v891_v7 = vpop.f32.mrb[24].mxu0 }
 0x2ce   : > { %v1027_v16 = vadd.f32 1.0, %v2271_v47  ;;  %2280 = verf.f32 %v968_v19  ;;  %v3193_v6 = vadd.f32 %v891_v7, %v3103_v61  ;;  %v893_v27 = vpop.f32.mrb[25].mxu0  ;;  %1212 = vmatprep.mubr.f32.mxu1 %v1057_v14 }
 0x2cf   : > { %2282 = verf.f32 %v969_v17  ;;  %v3197_v25 = vadd.f32 %v893_v27, %v3105_v63  ;;  %1213 = vmatmul.mubr.f32.gmra.mrb[14].mxu1 %v1056_v24  ;;  %v1058_v39 = vmul.f32 %v1026_v48, %v930_v28 }
 0x2d0   : > { %v2273_v12 = vpop.eup %2272  ;;  %v970_v38 = vmul.f32 0.70710677, %v3193_v6  ;;  %v1059_v8 = vmul.f32 %v1027_v16, %v931_v15  ;;  %v937_v15 = vmul.f32 0.5, %v3187_v13 }
 0x2d1   : > { %v2275_v59 = vpop.eup %2274  ;;  %v1028_v2 = vadd.f32 1.0, %v2273_v12  ;;  %v971_v18 = vmul.f32 0.70710677, %v3197_v25  ;;  %v897_v36 = vpop.f32.mrb[26].mxu0  ;;  %v939_v13 = vmul.f32 0.5, %v3197_v25 }
 0x2d2   : > { %v1029_v26 = vadd.f32 1.0, %v2275_v59  ;;  %2284 = verf.f32 %v970_v38  ;;  %v3203_v9 = vadd.f32 %v897_v36, %v3103_v61  ;;  %v899_v43 = vpop.f32.mrb[27].mxu0  ;;  %1217 = vmatprep.mubr.f32.mxu1 %v1059_v8 }
 0x2d3   : > { %2286 = verf.f32 %v971_v18  ;;  %v900_v33 = vadd.f32 %v899_v43, %v3105_v63  ;;  %1218 = vmatmul.mubr.f32.gmra.mrb[16].mxu1 %v1058_v39  ;;  %v1060_v34 = vmul.f32 %v1028_v2, %v932_v44 }
 0x2d4   : > { %v2277_v11 = vpop.eup %2276  ;;  %v972_v53 = vmul.f32 0.70710677, %v3203_v9  ;;  %v1061_v32 = vmul.f32 %v1029_v26, %v933_v42 }
 0x2d5   : > { %v2279_v30 = vpop.eup %2278  ;;  %v1030_v54 = vadd.f32 1.0, %v2277_v11  ;;  %v973_v31 = vmul.f32 0.70710677, %v900_v33  ;;  %v903_v56 = vpop.f32.mrb[28].mxu0  ;;  %v941_v11 = vmul.f32 0.5, %v900_v33 }
 0x2d6   : > { %v1031_v49 = vadd.f32 1.0, %v2279_v30  ;;  %2288 = verf.f32 %v972_v53  ;;  %v904_v0 = vadd.f32 %v903_v56, %v3103_v61  ;;  %v905_v40 = vpop.f32.mrb[29].mxu0  ;;  %1222 = vmatprep.mubr.f32.mxu1 %v1061_v32  ;;  %v940_v32 = vmul.f32 0.5, %v3203_v9 }
 0x2d7   : > { %2290 = verf.f32 %v973_v31  ;;  %v906_v5 = vadd.f32 %v905_v40, %v3105_v63  ;;  %1223 = vmatmul.mubr.f32.gmra.mrb[18].mxu1 %v1060_v34  ;;  %v1062_v50 = vmul.f32 %v1030_v54, %v934_v1 }
 0x2d8   : > { %v2281_v19 = vpop.eup %2280  ;;  %v974_v14 = vmul.f32 0.70710677, %v904_v0  ;;  %v1063_v47 = vmul.f32 %v1031_v49, %v935_v57  ;;  %v942_v57 = vmul.f32 0.5, %v904_v0  ;;  %v3222_v0 = vld [vmem:[%s3538_s6] ss:$0 sm:$0xff] }
 0x2d9   : > { %v2283_v48 = vpop.eup %2282  ;;  %v1032_v17 = vadd.f32 1.0, %v2281_v19  ;;  %v975_v7 = vmul.f32 0.70710677, %v906_v5  ;;  %v909_v24 = vpop.f32.mrb[30].mxu0  ;;  %v943_v34 = vmul.f32 0.5, %v906_v5 }
 0x2da   : > { %v1033_v16 = vadd.f32 1.0, %v2283_v48  ;;  %2292 = verf.f32 %v974_v14  ;;  %v910_v27 = vadd.f32 %v909_v24, %v3103_v61  ;;  %v911_v28 = vpop.f32.mrb[31].mxu0  ;;  %1227 = vmatprep.mubr.f32.mxu1 %v1063_v47  ;;  %v938_v61 = vmul.f32 0.5, %v3193_v6 }
 0x2db   : > { %2294 = verf.f32 %v975_v7  ;;  %v912_v12 = vadd.f32 %v911_v28, %v3105_v63  ;;  %1228 = vmatmul.mubr.f32.gmra.mrb[20].mxu1 %v1062_v50  ;;  %v1064_v39 = vmul.f32 %v1032_v17, %v936_v60 }
 0x2dc   : > { %v2285_v38 = vpop.eup %2284  ;;  %v976_v8 = vmul.f32 0.70710677, %v910_v27  ;;  %v1065_v59 = vmul.f32 %v1033_v16, %v937_v15  ;;  %v944_v9 = vmul.f32 0.5, %v910_v27 }
 0x2dd   : > { %v2287_v2 = vpop.eup %2286  ;;  %v1034_v18 = vadd.f32 1.0, %v2285_v38  ;;  %v977_v36 = vmul.f32 0.70710677, %v912_v12  ;;  %v945_v14 = vmul.f32 0.5, %v912_v12 }
 0x2de   : > { %v1035_v42 = vadd.f32 1.0, %v2287_v2  ;;  %2296 = verf.f32 %v976_v8  ;;  %1232 = vmatprep.mubr.f32.mxu1 %v1065_v59 }
 0x2df   : > { %2298 = verf.f32 %v977_v36  ;;  %1233 = vmatmul.mubr.f32.gmra.mrb[22].mxu1 %v1064_v39  ;;  %v1066_v44 = vmul.f32 %v1034_v18, %v938_v61 }
 0x2e0   : > { %v2289_v35 = vpop.eup %2288  ;;  %v1067_v26 = vmul.f32 %v1035_v42, %v939_v13 }
 0x2e1   : > { %v2291_v63 = vpop.eup %2290  ;;  %v1036_v43 = vadd.f32 1.0, %v2289_v35 }
 0x2e2   : > { %v1037_v53 = vadd.f32 1.0, %v2291_v63  ;;  %1237 = vmatprep.mubr.f32.mxu1 %v1067_v26 }
 0x2e3   : > { %1238 = vmatmul.mubr.f32.gmra.mrb[24].mxu1 %v1066_v44  ;;  %v1068_v56 = vmul.f32 %v1036_v43, %v940_v32 }
 0x2e4   : > { %v2293_v30 = vpop.eup %2292  ;;  %v1069_v25 = vmul.f32 %v1037_v53, %v941_v11 }
 0x2e5   : > { %v2295_v54 = vpop.eup %2294  ;;  %v1038_v31 = vadd.f32 1.0, %v2293_v30 }
 0x2e6   : > { %v1039_v6 = vadd.f32 1.0, %v2295_v54  ;;  %1242 = vmatprep.mubr.f32.mxu1 %v1069_v25 }
 0x2e7   : > { %1243 = vmatmul.mubr.f32.gmra.mrb[26].mxu1 %v1068_v56  ;;  %v1070_v33 = vmul.f32 %v1038_v31, %v942_v57 }
 0x2e8   : > { %v2297_v49 = vpop.eup %2296  ;;  %v1071_v40 = vmul.f32 %v1039_v6, %v943_v34 }
 0x2e9   : > { %v2299_v1 = vpop.eup %2298  ;;  %v1040_v19 = vadd.f32 1.0, %v2297_v49 }
 0x2ea   : > { %v1041_v47 = vadd.f32 1.0, %v2299_v1  ;;  %1247 = vmatprep.mubr.f32.mxu1 %v1071_v40 }
 0x2eb   : > { %1248 = vmatmul.mubr.f32.gmra.mrb[28].mxu1 %v1070_v33  ;;  %v1072_v17 = vmul.f32 %v1040_v19, %v944_v9 }
 0x2ec   : > { %v1073_v48 = vmul.f32 %v1041_v47, %v945_v14 }
 0x2ee   : > { %1252 = vmatprep.mubr.f32.mxu1 %v1073_v48 }
 0x2ef   : > { %1253 = vmatmul.mubr.f32.gmra.mrb[30].mxu1 %v1072_v17 }
 0x386   : > { %v1872_v7 = vpop.f32.mrb[0].mxu1 }
 0x387   : > { %v1873_v5 = vpop.f32.mrb[1].mxu1 }
 0x388   : > { %v1874_v24 = vadd.f32 %v1873_v5, %v1872_v7 }
 0x38a   : > { %v1180_v50 = vadd.f32 %v1874_v24, %v3222_v0  ;;  %v1875_v15 = vpop.f32.mrb[2].mxu1 }
 0x38b   : > { %v1876_v16 = vpop.f32.mrb[3].mxu1 }
 0x38c   : > { %v1877_v28 = vadd.f32 %v1876_v16, %v1875_v15  ;;  %v3226_v27 = vadd.f32 %v1180_v50, %v2991_v46 }
 0x38e   : > { %v1185_v60 = vadd.f32 %v1877_v28, %v3222_v0  ;;  %1276 = vadd.xlane.f32.xlu0 %v3226_v27  ;;  %v1878_v12 = vpop.f32.mrb[4].mxu1 }
 0x38f   : > { %v1879_v38 = vpop.f32.mrb[5].mxu1 }
 0x390   : > { %v1880_v8 = vadd.f32 %v1879_v38, %v1878_v12  ;;  %v3231_v59 = vadd.f32 %v1185_v60, %v2999_v55 }
 0x392   : > { %v1190_v2 = vadd.f32 %v1880_v8, %v3222_v0  ;;  %1278 = vadd.xlane.f32.xlu0 %v3231_v59  ;;  %v1881_v18 = vpop.f32.mrb[6].mxu1 }
 0x393   : > { %v1882_v36 = vpop.f32.mrb[7].mxu1 }
 0x394   : > { %v1883_v39 = vadd.f32 %v1882_v36, %v1881_v18  ;;  %v3236_v46 = vadd.f32 %v1190_v2, %v3006_v62 }
 0x396   : > { %v1195_v13 = vadd.f32 %v1883_v39, %v3222_v0  ;;  %1280 = vadd.xlane.f32.xlu0 %v3236_v46  ;;  %v1884_v42 = vpop.f32.mrb[8].mxu1 }
 0x397   : > { %v1885_v61 = vpop.f32.mrb[9].mxu1 }
 0x398   : > { %v1886_v35 = vadd.f32 %v1885_v61, %v1884_v42  ;;  %v3241_v55 = vadd.f32 %v1195_v13, %v3013_v4 }
 0x39a   : > { %v1200_v26 = vadd.f32 %v1886_v35, %v3222_v0  ;;  %1282 = vadd.xlane.f32.xlu0 %v3241_v55  ;;  %v1887_v63 = vpop.f32.mrb[10].mxu1 }
 0x39b   : > { %v1888_v43 = vpop.f32.mrb[11].mxu1 }
 0x39c   : > { %v1889_v44 = vadd.f32 %v1888_v43, %v1887_v63  ;;  %v3246_v62 = vadd.f32 %v1200_v26, %v3020_v23  ;;  %v1513_v43 = vld [vmem:[#allocation8 + $0x8] sm:$0xff] }
 0x39e   : > { %v1205_v11 = vadd.f32 %v1889_v44, %v3222_v0  ;;  %1284 = vadd.xlane.f32.xlu0 %v3246_v62  ;;  %v1890_v53 = vpop.f32.mrb[12].mxu1  ;;  %v1514_v44 = vld [vmem:[#allocation8 + $0x10] sm:$0xff] }
 0x39f   : > { %v1891_v32 = vpop.f32.mrb[13].mxu1 }
 0x3a0   : > { %v1892_v30 = vadd.f32 %v1891_v32, %v1890_v53  ;;  %v3251_v4 = vadd.f32 %v1205_v11, %v3027_v29  ;;  %v1515_v53 = vld [vmem:[#allocation8 + $0x18] sm:$0xff] }
 0x3a1   : > { %v2076_v32 = vpack.c.bf16 %v1515_v53, %v1514_v44  ;;  %v1523_v53 = vld [vmem:[#allocation8 + $0x58] sm:$0xff] }
 0x3a2   : > { %v1210_v25 = vadd.f32 %v1892_v30, %v3222_v0  ;;  %1286 = vadd.xlane.f32.xlu0 %v3251_v4  ;;  %v1893_v54 = vpop.f32.mrb[14].mxu1 }
 0x3a3   : > { %v1894_v31 = vpop.f32.mrb[15].mxu1 }
 0x3a4   : > { %v1895_v56 = vadd.f32 %v1894_v31, %v1893_v54  ;;  %v3256_v23 = vadd.f32 %v1210_v25, %v3034_v37 }
 0x3a6   : > { %v1215_v34 = vadd.f32 %v1895_v56, %v3222_v0  ;;  %1288 = vadd.xlane.f32.xlu0 %v3256_v23  ;;  %v1896_v6 = vpop.f32.mrb[16].mxu1 }
 0x3a7   : > { %v1897_v57 = vpop.f32.mrb[17].mxu1 }
 0x3a8   : > { %v1898_v49 = vadd.f32 %v1897_v57, %v1896_v6  ;;  %v3261_v29 = vadd.f32 %v1215_v34, %v3041_v45 }
 0x3aa   : > { %v1220_v40 = vadd.f32 %v1898_v49, %v3222_v0  ;;  %1290 = vadd.xlane.f32.xlu0 %v3261_v29  ;;  %v1899_v1 = vpop.f32.mrb[18].mxu1 }
 0x3ab   : > { %v1900_v19 = vpop.f32.mrb[19].mxu1 }
 0x3ac   : > { %v1901_v33 = vadd.f32 %v1900_v19, %v1899_v1  ;;  %v3266_v37 = vadd.f32 %v1220_v40, %v3048_v52 }
 0x3ae   : > { %v1225_v14 = vadd.f32 %v1901_v33, %v3222_v0  ;;  %1292 = vadd.xlane.f32.xlu1 %v3266_v37  ;;  %v1902_v47 = vpop.f32.mrb[20].mxu1 }
 0x3af   : > { %v1903_v9 = vpop.f32.mrb[21].mxu1 }
 0x3b0   : > { %v1904_v48 = vadd.f32 %v1903_v9, %v1902_v47  ;;  %v3271_v45 = vadd.f32 %v1225_v14, %v3055_v58 }
 0x3b2   : > { %v1230_v17 = vadd.f32 %v1904_v48, %v3222_v0  ;;  %1294 = vadd.xlane.f32.xlu1 %v3271_v45  ;;  %v1905_v7 = vpop.f32.mrb[22].mxu1 }
 0x3b3   : > { %v1906_v5 = vpop.f32.mrb[23].mxu1 }
 0x3b4   : > { %v1907_v24 = vadd.f32 %v1906_v5, %v1905_v7  ;;  %v3276_v52 = vadd.f32 %v1230_v17, %v3062_v51 }
 0x3b6   : > { %v1235_v50 = vadd.f32 %v1907_v24, %v3222_v0  ;;  %1296 = vadd.xlane.f32.xlu1 %v3276_v52  ;;  %v1908_v15 = vpop.f32.mrb[24].mxu1 }
 0x3b7   : > { %v1909_v16 = vpop.f32.mrb[25].mxu1 }
 0x3b8   : > { %v1910_v28 = vadd.f32 %v1909_v16, %v1908_v15  ;;  %v3281_v58 = vadd.f32 %v1235_v50, %v3069_v10  ;;  %v1516_v50 = vld [vmem:[#allocation8 + $0x20] sm:$0xff]  ;;  %v1517_v15 = vld [vmem:[#allocation8 + $0x28] sm:$0xff] }
 0x3ba   : > { %v1240_v60 = vadd.f32 %v1910_v28, %v3222_v0  ;;  %1298 = vadd.xlane.f32.xlu1 %v3281_v58  ;;  %v1911_v12 = vpop.f32.mrb[26].mxu1  ;;  %v2080_v28 = vpack.c.bf16 %v1517_v15, %v1516_v50 }
 0x3bb   : > { %v1912_v38 = vpop.f32.mrb[27].mxu1 }
 0x3bc   : > { %v1913_v8 = vadd.f32 %v1912_v38, %v1911_v12  ;;  %v3286_v51 = vadd.f32 %v1240_v60, %v3076_v3 }
 0x3be   : > { %v1245_v2 = vadd.f32 %v1913_v8, %v3222_v0  ;;  %1300 = vadd.xlane.f32.xlu1 %v3286_v51  ;;  %v1914_v18 = vpop.f32.mrb[28].mxu1  ;;  %v1519_v8 = vld [vmem:[#allocation8 + $0x38] sm:$0xff] }
 0x3bf   : > { %v1915_v36 = vpop.f32.mrb[29].mxu1 }
 0x3c0   : > { %v1916_v39 = vadd.f32 %v1915_v36, %v1914_v18  ;;  %v3291_v10 = vadd.f32 %v1245_v2, %v3083_v20  ;;  %v1512_v20 = vld [vmem:[#allocation8] sm:$0xff] }
 0x3c1   : > { %v2072_v11 = vpack.c.bf16 %v1513_v43, %v1512_v20 }
 0x3c2   : > { %v1250_v13 = vadd.f32 %v1916_v39, %v3222_v0  ;;  %1302 = vadd.xlane.f32.xlu1 %v3291_v10  ;;  %v1917_v42 = vpop.f32.mrb[30].mxu1 }
 0x3c3   : > { %v1918_v61 = vpop.f32.mrb[31].mxu1  ;;  %2073 = vmatprep.subr.bf16.mxu0 %v2072_v11  ;;  %2104 = vmatprep.subr.bf16.mxu1 %v2072_v11 }
 0x3c4   : > { %v1919_v35 = vadd.f32 %v1918_v61, %v1917_v42  ;;  %v3296_v3 = vadd.f32 %v1250_v13, %v3090_v21  ;;  %2075 = vmatpush3.bf16.msra.mxu0 %v2072_v11  ;;  %2112 = vmatpush3.bf16.msra.mxu1 %v2072_v11  ;;  %v1520_v42 = vld [vmem:[#allocation8 + $0x40] sm:$0xff]  ;;  %v1521_v61 = vld [vmem:[#allocation8 + $0x48] sm:$0xff]  ;;  %v1522_v11 = vld [vmem:[#allocation8 + $0x50] sm:$0xff] }
 0x3c5   : > { %2077 = vmatprep.subr.bf16.mxu0 %v2076_v32  ;;  %2105 = vmatprep.subr.bf16.mxu1 %v2076_v32 }
 0x3c6   : > { %v1255_v26 = vadd.f32 %v1919_v35, %v3222_v0  ;;  %1304 = vadd.xlane.f32.xlu1 %v3296_v3 }
 0x3c8   : > { %v3301_v63 = vadd.f32 %v1255_v26, %v3096_v22  ;;  %2079 = vmatpush3.bf16.msra.mxu0 %v2076_v32  ;;  %2113 = vmatpush3.bf16.msra.mxu1 %v2076_v32  ;;  %v2088_v26 = vpack.c.bf16 %v1521_v61, %v1520_v42 }
 0x3c9   : > { %2081 = vmatprep.subr.bf16.mxu0 %v2080_v28  ;;  %2106 = vmatprep.subr.bf16.mxu1 %v2080_v28 }
 0x3ca   : > { %1306 = vadd.xlane.f32.xlu1 %v3301_v63 }
 0x3cc   : > { %2083 = vmatpush3.bf16.msra.mxu0 %v2080_v28  ;;  %2114 = vmatpush3.bf16.msra.mxu1 %v2080_v28 }
 0x41b   : > { %v1277_v21 = vpop.xlane.xlu0 %1276 }
 0x41c   : > { %v1308_v0 = vmul.f32 0.010416667, %v1277_v21  ;;  %v2092_v21 = vpack.c.bf16 %v1523_v53, %v1522_v11 }
 0x41e   : > { %v1324_v22 = vsub.f32 %v3226_v27, %v1308_v0 }
 0x41f   : > { %v1279_v30 = vpop.xlane.xlu0 %1278 }
 0x420   : > { %v1309_v25 = vmul.f32 0.010416667, %v1279_v30  ;;  %v3306_v54 = vmul.f32 %v1324_v22, %v2880_v41 }
 0x422   : > { %v1325_v31 = vsub.f32 %v3231_v59, %v1309_v25  ;;  %v1356_v56 = vmul.f32 %v3306_v54, %v3306_v54  ;;  %v1524_v25 = vld [vmem:[#allocation8 + $0x60] sm:$0xff] }
 0x423   : > { %v1281_v34 = vpop.xlane.xlu0 %1280 }
 0x424   : > { %v1310_v6 = vmul.f32 0.010416667, %v1281_v34  ;;  %1372 = vadd.xlane.f32.xlu0 %v1356_v56  ;;  %v3312_v57 = vmul.f32 %v1325_v31, %v2880_v41  ;;  %v1525_v31 = vld [vmem:[#allocation8 + $0x68] sm:$0xff] }
 0x425   : > { %v2096_v34 = vpack.c.bf16 %v1525_v31, %v1524_v25  ;;  %v3409_v25 = vld [vmem:[%s3571_s29] ss:$0 sm:$0xff] }
 0x426   : > { %v1326_v49 = vsub.f32 %v3236_v46, %v1310_v6  ;;  %v1357_v27 = vmul.f32 %v3312_v57, %v3312_v57 }
 0x427   : > { %v1283_v40 = vpop.xlane.xlu0 %1282 }
 0x428   : > { %v1311_v1 = vmul.f32 0.010416667, %v1283_v40  ;;  %1374 = vadd.xlane.f32.xlu0 %v1357_v27  ;;  %v3318_v19 = vmul.f32 %v1326_v49, %v2880_v41  ;;  %v1526_v40 = vld [vmem:[#allocation8 + $0x70] sm:$0xff] }
 0x42a   : > { %v1327_v59 = vsub.f32 %v3241_v55, %v1311_v1  ;;  %v1358_v33 = vmul.f32 %v3318_v19, %v3318_v19  ;;  %v1527_v1 = vld [vmem:[#allocation8 + $0x78] sm:$0xff] }
 0x42b   : > { %v1285_v14 = vpop.xlane.xlu0 %1284 }
 0x42c   : > { %v1312_v47 = vmul.f32 0.010416667, %v1285_v14  ;;  %1376 = vadd.xlane.f32.xlu0 %v1358_v33  ;;  %v3324_v9 = vmul.f32 %v1327_v59, %v2880_v41  ;;  %v2100_v33 = vpack.c.bf16 %v1527_v1, %v1526_v40 }
 0x42e   : > { %v1328_v46 = vsub.f32 %v3246_v62, %v1312_v47  ;;  %v1359_v48 = vmul.f32 %v3324_v9, %v3324_v9 }
 0x42f   : > { %v1287_v17 = vpop.xlane.xlu0 %1286 }
 0x430   : > { %v1313_v7 = vmul.f32 0.010416667, %v1287_v17  ;;  %1378 = vadd.xlane.f32.xlu0 %v1359_v48  ;;  %v3330_v5 = vmul.f32 %v1328_v46, %v2880_v41 }
 0x432   : > { %v1329_v55 = vsub.f32 %v3251_v4, %v1313_v7  ;;  %v1360_v24 = vmul.f32 %v3330_v5, %v3330_v5  ;;  %v1518_v4 = vld [vmem:[#allocation8 + $0x30] sm:$0xff] }
 0x433   : > { %v1289_v16 = vpop.xlane.xlu0 %1288  ;;  %v2084_v18 = vpack.c.bf16 %v1519_v8, %v1518_v4 }
 0x434   : > { %v1314_v60 = vmul.f32 0.010416667, %v1289_v16  ;;  %1380 = vadd.xlane.f32.xlu0 %v1360_v24  ;;  %v3336_v62 = vmul.f32 %v1329_v55, %v2880_v41 }
 0x435   : > { %2085 = vmatprep.subr.bf16.mxu0 %v2084_v18  ;;  %2107 = vmatprep.subr.bf16.mxu1 %v2084_v18 }
 0x436   : > { %v1330_v12 = vsub.f32 %v3256_v23, %v1314_v60  ;;  %v1361_v38 = vmul.f32 %v3336_v62, %v3336_v62  ;;  %2087 = vmatpush3.bf16.msra.mxu0 %v2084_v18  ;;  %2115 = vmatpush3.bf16.msra.mxu1 %v2084_v18 }
 0x437   : > { %v1291_v2 = vpop.xlane.xlu0 %1290  ;;  %2089 = vmatprep.subr.bf16.mxu0 %v2088_v26  ;;  %2108 = vmatprep.subr.bf16.mxu1 %v2088_v26 }
 0x438   : > { %v1315_v36 = vmul.f32 0.010416667, %v1291_v2  ;;  %1382 = vadd.xlane.f32.xlu0 %v1361_v38  ;;  %v3342_v39 = vmul.f32 %v1330_v12, %v2880_v41 }
 0x43a   : > { %v1331_v13 = vsub.f32 %v3261_v29, %v1315_v36  ;;  %v1362_v23 = vmul.f32 %v3342_v39, %v3342_v39  ;;  %2091 = vmatpush3.bf16.msra.mxu0 %v2088_v26  ;;  %2116 = vmatpush3.bf16.msra.mxu1 %v2088_v26 }
 0x43b   : > { %v1293_v35 = vpop.xlane.xlu1 %1292  ;;  %2093 = vmatprep.subr.bf16.mxu0 %v2092_v21  ;;  %2109 = vmatprep.subr.bf16.mxu1 %v2092_v21 }
 0x43c   : > { %v1316_v20 = vmul.f32 0.010416667, %v1293_v35  ;;  %1384 = vadd.xlane.f32.xlu0 %v1362_v23  ;;  %v3348_v43 = vmul.f32 %v1331_v13, %v2880_v41 }
 0x43e   : > { %v1332_v44 = vsub.f32 %v3266_v37, %v1316_v20  ;;  %v1363_v29 = vmul.f32 %v3348_v43, %v3348_v43  ;;  %2095 = vmatpush3.bf16.msra.mxu0 %v2092_v21  ;;  %2117 = vmatpush3.bf16.msra.mxu1 %v2092_v21  ;;  %v3403_v21 = vld [vmem:[%s3539_s7] ss:$0 sm:$0xff] }
 0x43f   : > { %v1295_v32 = vpop.xlane.xlu1 %1294  ;;  %2097 = vmatprep.subr.bf16.mxu0 %v2096_v34  ;;  %2110 = vmatprep.subr.bf16.mxu1 %v2096_v34 }
 0x440   : > { %v1317_v0 = vmul.f32 0.010416667, %v1295_v32  ;;  %1386 = vadd.xlane.f32.xlu0 %v1363_v29  ;;  %v3354_v22 = vmul.f32 %v1332_v44, %v2880_v41 }
 0x442   : > { %v1333_v30 = vsub.f32 %v3271_v45, %v1317_v0  ;;  %v1364_v37 = vmul.f32 %v3354_v22, %v3354_v22  ;;  %2099 = vmatpush3.bf16.msra.mxu0 %v2096_v34  ;;  %2118 = vmatpush3.bf16.msra.mxu1 %v2096_v34 }
 0x443   : > { %v1297_v56 = vpop.xlane.xlu1 %1296  ;;  %2101 = vmatprep.subr.bf16.mxu0 %v2100_v33  ;;  %2111 = vmatprep.subr.bf16.mxu1 %v2100_v33 }
 0x444   : > { %v1318_v6 = vmul.f32 0.010416667, %v1297_v56  ;;  %1388 = vadd.xlane.f32.xlu1 %v1364_v37  ;;  %v3360_v49 = vmul.f32 %v1333_v30, %v2880_v41 }
 0x446   : > { %v1334_v27 = vsub.f32 %v3276_v52, %v1318_v6  ;;  %v1365_v45 = vmul.f32 %v3360_v49, %v3360_v49  ;;  %2103 = vmatpush3.bf16.msra.mxu0 %v2100_v33  ;;  %2119 = vmatpush3.bf16.msra.mxu1 %v2100_v33 }
 0x447   : > { %v1299_v59 = vpop.xlane.xlu1 %1298 }
 0x448   : > { %v1319_v14 = vmul.f32 0.010416667, %v1299_v59  ;;  %1390 = vadd.xlane.f32.xlu1 %v1365_v45  ;;  %v3366_v47 = vmul.f32 %v1334_v27, %v2880_v41 }
 0x44a   : > { %v1335_v46 = vsub.f32 %v3281_v58, %v1319_v14  ;;  %v1366_v52 = vmul.f32 %v3366_v47, %v3366_v47 }
 0x44b   : > { %v1301_v48 = vpop.xlane.xlu1 %1300 }
 0x44c   : > { %v1320_v17 = vmul.f32 0.010416667, %v1301_v48  ;;  %1392 = vadd.xlane.f32.xlu1 %v1366_v52  ;;  %v3372_v7 = vmul.f32 %v1335_v46, %v2880_v41 }
 0x44e   : > { %v1336_v55 = vsub.f32 %v3286_v51, %v1320_v17  ;;  %v1367_v24 = vmul.f32 %v3372_v7, %v3372_v7 }
 0x44f   : > { %v1303_v50 = vpop.xlane.xlu1 %1302 }
 0x450   : > { %v1321_v15 = vmul.f32 0.010416667, %v1303_v50  ;;  %1394 = vadd.xlane.f32.xlu1 %v1367_v24  ;;  %v3378_v58 = vmul.f32 %v1336_v55, %v2880_v41 }
 0x452   : > { %v1337_v16 = vsub.f32 %v3291_v10, %v1321_v15  ;;  %v1368_v28 = vmul.f32 %v3378_v58, %v3378_v58 }
 0x453   : > { %v1305_v60 = vpop.xlane.xlu1 %1304 }
 0x454   : > { %v1322_v12 = vmul.f32 0.010416667, %v1305_v60  ;;  %1396 = vadd.xlane.f32.xlu1 %v1368_v28  ;;  %v3384_v38 = vmul.f32 %v1337_v16, %v2880_v41 }
 0x456   : > { %v1338_v51 = vsub.f32 %v3296_v3, %v1322_v12  ;;  %v1369_v4 = vmul.f32 %v3384_v38, %v3384_v38 }
 0x457   : > { %v1307_v8 = vpop.xlane.xlu1 %1306 }
 0x458   : > { %v1323_v2 = vmul.f32 0.010416667, %v1307_v8  ;;  %1398 = vadd.xlane.f32.xlu1 %v1369_v4  ;;  %v3390_v18 = vmul.f32 %v1338_v51, %v2880_v41 }
 0x45a   : > { %v1339_v10 = vsub.f32 %v3301_v63, %v1323_v2  ;;  %v1370_v36 = vmul.f32 %v3390_v18, %v3390_v18 }
 0x45c   : > { %1400 = vadd.xlane.f32.xlu1 %v1370_v36  ;;  %v3396_v13 = vmul.f32 %v1339_v10, %v2880_v41 }
 0x45e   : > { %v1371_v3 = vmul.f32 %v3396_v13, %v3396_v13 }
 0x460   : > { %1402 = vadd.xlane.f32.xlu1 %v1371_v3 }
 0x4b1   : > { %v1373_v23 = vpop.xlane.xlu0 %1372 }
 0x4b2   : > { %v1404_v42 = vmul.f32 0.010416667, %v1373_v23 }
 0x4b4   : > { %v1420_v61 = vadd.f32 1e-05, %v1404_v42 }
 0x4b5   : > { %v1375_v35 = vpop.xlane.xlu0 %1374 }
 0x4b6   : > { %2300 = vrsqrt.f32 %v1420_v61  ;;  %v1405_v26 = vmul.f32 0.010416667, %v1375_v35 }
 0x4b8   : > { %v1421_v20 = vadd.f32 1e-05, %v1405_v26 }
 0x4b9   : > { %v1377_v44 = vpop.xlane.xlu0 %1376 }
 0x4ba   : > { %2302 = vrsqrt.f32 %v1421_v20  ;;  %v1406_v63 = vmul.f32 0.010416667, %v1377_v44 }
 0x4bc   : > { %v1422_v29 = vadd.f32 1e-05, %v1406_v63 }
 0x4bd   : > { %v1379_v11 = vpop.xlane.xlu0 %1378 }
 0x4be   : > { %2304 = vrsqrt.f32 %v1422_v29  ;;  %v1407_v53 = vmul.f32 0.010416667, %v1379_v11 }
 0x4c0   : > { %v2301_v41 = vpop.eup %2300  ;;  %v1423_v32 = vadd.f32 1e-05, %v1407_v53 }
 0x4c1   : > { %v1381_v0 = vpop.xlane.xlu0 %1380  ;;  %v1452_v30 = vmul.f32 %v2301_v41, %v3306_v54 }
 0x4c2   : > { %2306 = vrsqrt.f32 %v1423_v32  ;;  %v1408_v37 = vmul.f32 0.010416667, %v1381_v0 }
 0x4c3   : > { %v1474_v31 = vmul.f32 %v3403_v21, %v1452_v30 }
 0x4c4   : > { %v2303_v56 = vpop.eup %2302  ;;  %v1424_v34 = vadd.f32 1e-05, %v1408_v37 }
 0x4c5   : > { %v1453_v6 = vmul.f32 %v2303_v56, %v3312_v57  ;;  %v1383_v27 = vpop.xlane.xlu0 %1382  ;;  %v1496_v45 = vadd.f32 %v3409_v25, %v1474_v31 }
 0x4c6   : > { %2308 = vrsqrt.f32 %v1424_v34  ;;  %v1409_v40 = vmul.f32 0.010416667, %v1383_v27 }
 0x4c7   : > { %1984 = vmatprep.mubr.f32.mxu0 %v1496_v45  ;;  %v1475_v54 = vmul.f32 %v3403_v21, %v1453_v6 }
 0x4c8   : > { %v2305_v1 = vpop.eup %2304  ;;  %v1425_v59 = vadd.f32 1e-05, %v1409_v40 }
 0x4c9   : > { %v1385_v33 = vpop.xlane.xlu0 %1384  ;;  %v1497_v14 = vadd.f32 %v3409_v25, %v1475_v54  ;;  %v1454_v46 = vmul.f32 %v2305_v1, %v3318_v19 }
 0x4ca   : > { %2310 = vrsqrt.f32 %v1425_v59  ;;  %v1410_v52 = vmul.f32 0.010416667, %v1385_v33 }
 0x4cb   : > { %1985 = vmatmul.mubr.f32.vlgmr.msra.gmra.mrb[32].mxu0 %v1497_v14  ;;  %v1476_v57 = vmul.f32 %v3403_v21, %v1454_v46 }
 0x4cc   : > { %v2307_v48 = vpop.eup %2306  ;;  %v1426_v17 = vadd.f32 1e-05, %v1410_v52 }
 0x4cd   : > { %v1387_v55 = vpop.xlane.xlu0 %1386  ;;  %v1498_v24 = vadd.f32 %v3409_v25, %v1476_v57  ;;  %v1455_v50 = vmul.f32 %v2307_v48, %v3324_v9 }
 0x4ce   : > { %2312 = vrsqrt.f32 %v1426_v17  ;;  %v1411_v15 = vmul.f32 0.010416667, %v1387_v55 }
 0x4cf   : > { %1987 = vmatprep.mubr.f32.mxu0 %v1498_v24  ;;  %v1477_v16 = vmul.f32 %v3403_v21, %v1455_v50 }
 0x4d0   : > { %v2309_v28 = vpop.eup %2308  ;;  %v1427_v60 = vadd.f32 1e-05, %v1411_v15 }
 0x4d1   : > { %v1389_v19 = vpop.xlane.xlu1 %1388  ;;  %v1499_v12 = vadd.f32 %v3409_v25, %v1477_v16  ;;  %v1456_v51 = vmul.f32 %v2309_v28, %v3330_v5 }
 0x4d2   : > { %2314 = vrsqrt.f32 %v1427_v60  ;;  %v1412_v4 = vmul.f32 0.010416667, %v1389_v19 }
 0x4d3   : > { %1988 = vmatmul.mubr.f32.gmra.mrb[34].mxu0 %v1499_v12  ;;  %v1478_v8 = vmul.f32 %v3403_v21, %v1456_v51 }
 0x4d4   : > { %v2311_v2 = vpop.eup %2310  ;;  %v1428_v10 = vadd.f32 1e-05, %v1412_v4 }
 0x4d5   : > { %v1391_v9 = vpop.xlane.xlu1 %1390  ;;  %v1500_v36 = vadd.f32 %v3409_v25, %v1478_v8  ;;  %v1457_v3 = vmul.f32 %v2311_v2, %v3336_v62 }
 0x4d6   : > { %2316 = vrsqrt.f32 %v1428_v10  ;;  %v1413_v23 = vmul.f32 0.010416667, %v1391_v9 }
 0x4d7   : > { %1990 = vmatprep.mubr.f32.mxu0 %v1500_v36  ;;  %v1479_v42 = vmul.f32 %v3403_v21, %v1457_v3 }
 0x4d8   : > { %v2313_v61 = vpop.eup %2312  ;;  %v1429_v35 = vadd.f32 1e-05, %v1413_v23 }
 0x4d9   : > { %v1393_v5 = vpop.xlane.xlu1 %1392  ;;  %v1501_v26 = vadd.f32 %v3409_v25, %v1479_v42  ;;  %v1458_v20 = vmul.f32 %v2313_v61, %v3342_v39  ;;  %v1832_v61 = vld [vmem:[%s3572_s25] ss:$0 sm:$0xff] }
 0x4da   : > { %2318 = vrsqrt.f32 %v1429_v35  ;;  %v1414_v44 = vmul.f32 0.010416667, %v1393_v5 }
 0x4db   : > { %1991 = vmatmul.mubr.f32.gmra.mrb[36].mxu0 %v1501_v26  ;;  %v1480_v63 = vmul.f32 %v3403_v21, %v1458_v20 }
 0x4dc   : > { %v2315_v29 = vpop.eup %2314  ;;  %v1430_v11 = vadd.f32 1e-05, %v1414_v44 }
 0x4dd   : > { %v1395_v62 = vpop.xlane.xlu1 %1394  ;;  %v1502_v53 = vadd.f32 %v3409_v25, %v1480_v63  ;;  %v1459_v41 = vmul.f32 %v2315_v29, %v3348_v43 }
 0x4de   : > { %2320 = vrsqrt.f32 %v1430_v11  ;;  %v1415_v32 = vmul.f32 0.010416667, %v1395_v62 }
 0x4df   : > { %1993 = vmatprep.mubr.f32.mxu0 %v1502_v53  ;;  %v1481_v0 = vmul.f32 %v3403_v21, %v1459_v41 }
 0x4e0   : > { %v2317_v30 = vpop.eup %2316  ;;  %v1431_v37 = vadd.f32 1e-05, %v1415_v32 }
 0x4e1   : > { %v1397_v39 = vpop.xlane.xlu1 %1396  ;;  %v1503_v31 = vadd.f32 %v3409_v25, %v1481_v0  ;;  %v1460_v56 = vmul.f32 %v2317_v30, %v3354_v22 }
 0x4e2   : > { %2322 = vrsqrt.f32 %v1431_v37  ;;  %v1416_v34 = vmul.f32 0.010416667, %v1397_v39 }
 0x4e3   : > { %1994 = vmatmul.mubr.f32.gmra.mrb[38].mxu0 %v1503_v31  ;;  %v1482_v6 = vmul.f32 %v3403_v21, %v1460_v56 }
 0x4e4   : > { %v2319_v27 = vpop.eup %2318  ;;  %v1432_v45 = vadd.f32 1e-05, %v1416_v34 }
 0x4e5   : > { %v1461_v43 = vmul.f32 %v2319_v27, %v3360_v49  ;;  %v1399_v40 = vpop.xlane.xlu1 %1398  ;;  %v1504_v54 = vadd.f32 %v3409_v25, %v1482_v6 }
 0x4e6   : > { %2324 = vrsqrt.f32 %v1432_v45  ;;  %v1417_v1 = vmul.f32 0.010416667, %v1399_v40 }
 0x4e7   : > { %1996 = vmatprep.mubr.f32.mxu1 %v1504_v54  ;;  %v1483_v59 = vmul.f32 %v3403_v21, %v1461_v43 }
 0x4e8   : > { %v2321_v33 = vpop.eup %2320  ;;  %v1433_v14 = vadd.f32 1e-05, %v1417_v1 }
 0x4e9   : > { %v1401_v22 = vpop.xlane.xlu1 %1400  ;;  %v1505_v46 = vadd.f32 %v3409_v25, %v1483_v59  ;;  %v1462_v52 = vmul.f32 %v2321_v33, %v3366_v47 }
 0x4ea   : > { %2326 = vrsqrt.f32 %v1433_v14  ;;  %v1418_v57 = vmul.f32 0.010416667, %v1401_v22 }
 0x4eb   : > { %1997 = vmatmul.mubr.f32.vlgmr.msra.gmra.mrb[32].mxu1 %v1505_v46  ;;  %v1484_v49 = vmul.f32 %v3403_v21, %v1462_v52 }
 0x4ec   : > { %v2323_v48 = vpop.eup %2322  ;;  %v1434_v17 = vadd.f32 1e-05, %v1418_v57 }
 0x4ed   : > { %v1403_v55 = vpop.xlane.xlu1 %1402  ;;  %v1506_v24 = vadd.f32 %v3409_v25, %v1484_v49  ;;  %v1463_v50 = vmul.f32 %v2323_v48, %v3372_v7 }
 0x4ee   : > { %2328 = vrsqrt.f32 %v1434_v17  ;;  %v1419_v15 = vmul.f32 0.010416667, %v1403_v55 }
 0x4ef   : > { %1999 = vmatprep.mubr.f32.mxu1 %v1506_v24  ;;  %v1485_v16 = vmul.f32 %v3403_v21, %v1463_v50 }
 0x4f0   : > { %v2325_v28 = vpop.eup %2324  ;;  %v1435_v60 = vadd.f32 1e-05, %v1419_v15 }
 0x4f1   : > { %v1507_v47 = vadd.f32 %v3409_v25, %v1485_v16  ;;  %v1464_v19 = vmul.f32 %v2325_v28, %v3378_v58 }
 0x4f2   : > { %2330 = vrsqrt.f32 %v1435_v60 }
 0x4f3   : > { %2000 = vmatmul.mubr.f32.gmra.mrb[34].mxu1 %v1507_v47  ;;  %v1486_v12 = vmul.f32 %v3403_v21, %v1464_v19 }
 0x4f4   : > { %v2327_v51 = vpop.eup %2326 }
 0x4f5   : > { %v1508_v4 = vadd.f32 %v3409_v25, %v1486_v12  ;;  %v1465_v7 = vmul.f32 %v2327_v51, %v3384_v38 }
 0x4f7   : > { %2002 = vmatprep.mubr.f32.mxu1 %v1508_v4  ;;  %v1487_v8 = vmul.f32 %v3403_v21, %v1465_v7 }
 0x4f8   : > { %v2329_v2 = vpop.eup %2328 }
 0x4f9   : > { %v1509_v10 = vadd.f32 %v3409_v25, %v1487_v8  ;;  %v1466_v9 = vmul.f32 %v2329_v2, %v3390_v18 }
 0x4fb   : > { %2003 = vmatmul.mubr.f32.gmra.mrb[36].mxu1 %v1509_v10  ;;  %v1488_v58 = vmul.f32 %v3403_v21, %v1466_v9 }
 0x4fc   : > { %v2331_v36 = vpop.eup %2330 }
 0x4fd   : > { %v1510_v3 = vadd.f32 %v3409_v25, %v1488_v58  ;;  %v1467_v23 = vmul.f32 %v2331_v36, %v3396_v13 }
 0x4ff   : > { %2005 = vmatprep.mubr.f32.mxu1 %v1510_v3  ;;  %v1489_v38 = vmul.f32 %v3403_v21, %v1467_v23 }
 0x501   : > { %v1511_v42 = vadd.f32 %v3409_v25, %v1489_v38 }
 0x503   : > { %2006 = vmatmul.mubr.f32.gmra.mrb[38].mxu1 %v1511_v42 }
 0x59e   : > { %v1986_v35 = vpop.f32.mrb[32].mxu0 }
 0x59f   : > { %v1607_v18 = vadd.f32 %v1986_v35, %v1832_v61  ;;  %v1601_v5 = vpop.f32.mrb[33].mxu0 }
 0x5a0   : > { %v1602_v26 = vadd.f32 %v1832_v61, %v1601_v5 }
 0x5a1   : > { %1681 = vst [vmem:[%s3463_s11 + $0x8] sm:$0xff] %v1607_v18 }
 0x5a2   : > { %1680 = vst [vmem:[%s3463_s11] sm:$0xff] %v1602_v26 }
 0x5a6   : > { %v1989_v13 = vpop.f32.mrb[34].mxu0 }
 0x5a7   : > { %v1617_v21 = vadd.f32 %v1989_v13, %v1832_v61  ;;  %v1611_v25 = vpop.f32.mrb[35].mxu0 }
 0x5a8   : > { %v1612_v20 = vadd.f32 %v1832_v61, %v1611_v25 }
 0x5a9   : > { %1683 = vst [vmem:[%s3463_s11 + $0x18] sm:$0xff] %v1617_v21 }
 0x5aa   : > { %1682 = vst [vmem:[%s3463_s11 + $0x10] sm:$0xff] %v1612_v20 }
 0x5ae   : > { %v1992_v44 = vpop.f32.mrb[36].mxu0 }
 0x5af   : > { %v1627_v63 = vadd.f32 %v1992_v44, %v1832_v61  ;;  %v1621_v29 = vpop.f32.mrb[37].mxu0 }
 0x5b0   : > { %v1622_v11 = vadd.f32 %v1832_v61, %v1621_v29 }
 0x5b1   : > { %1685 = vst [vmem:[%s3463_s11 + $0x28] sm:$0xff] %v1627_v63 }
 0x5b2   : > { %1684 = vst [vmem:[%s3463_s11 + $0x20] sm:$0xff] %v1622_v11 }
 0x5b6   : > { %v1995_v62 = vpop.f32.mrb[38].mxu0 }
 0x5b7   : > { %v1637_v53 = vadd.f32 %v1995_v62, %v1832_v61  ;;  %v1631_v41 = vpop.f32.mrb[39].mxu0 }
 0x5b8   : > { %v1632_v32 = vadd.f32 %v1832_v61, %v1631_v41 }
 0x5b9   : > { %1687 = vst [vmem:[%s3463_s11 + $0x38] sm:$0xff] %v1637_v53 }
 0x5ba   : > { %1686 = vst [vmem:[%s3463_s11 + $0x30] sm:$0xff] %v1632_v32 }
 0x5be   : > { %v1998_v0 = vpop.f32.mrb[32].mxu1 }
 0x5bf   : > { %v1647_v30 = vadd.f32 %v1998_v0, %v1832_v61  ;;  %v1641_v37 = vpop.f32.mrb[33].mxu1 }
 0x5c0   : > { %v1642_v39 = vadd.f32 %v1832_v61, %v1641_v37 }
 0x5c1   : > { %1689 = vst [vmem:[%s3463_s11 + $0x48] sm:$0xff] %v1647_v30 }
 0x5c2   : > { %1688 = vst [vmem:[%s3463_s11 + $0x40] sm:$0xff] %v1642_v39 }
 0x5c6   : > { %v2001_v31 = vpop.f32.mrb[34].mxu1 }
 0x5c7   : > { %v1657_v56 = vadd.f32 %v2001_v31, %v1832_v61  ;;  %v1651_v34 = vpop.f32.mrb[35].mxu1 }
 0x5c8   : > { %v1652_v6 = vadd.f32 %v1832_v61, %v1651_v34 }
 0x5c9   : > { %1691 = vst [vmem:[%s3463_s11 + $0x58] sm:$0xff] %v1657_v56 }
 0x5ca   : > { %1690 = vst [vmem:[%s3463_s11 + $0x50] sm:$0xff] %v1652_v6 }
 0x5ce   : > { %v2004_v27 = vpop.f32.mrb[36].mxu1 }
 0x5cf   : > { %v1667_v45 = vadd.f32 %v2004_v27, %v1832_v61  ;;  %v1661_v43 = vpop.f32.mrb[37].mxu1 }
 0x5d0   : > { %v1662_v40 = vadd.f32 %v1832_v61, %v1661_v43 }
 0x5d1   : > { %1693 = vst [vmem:[%s3463_s11 + $0x68] sm:$0xff] %v1667_v45 }
 0x5d2   : > { %1692 = vst [vmem:[%s3463_s11 + $0x60] sm:$0xff] %v1662_v40 }
 0x5d6   : > { %v2007_v54 = vpop.f32.mrb[38].mxu1 }
 0x5d7   : > { %v1677_v1 = vadd.f32 %v2007_v54, %v1832_v61  ;;  %v1671_v59 = vpop.f32.mrb[39].mxu1 }
 0x5d8   : > { %v1672_v33 = vadd.f32 %v1832_v61, %v1671_v59 }
 0x5d9   : > { %1695 = vst [vmem:[%s3463_s11 + $0x78] sm:$0xff] %v1677_v1 }
 0x5da   : > { %1694 = vst [vmem:[%s3463_s11 + $0x70] sm:$0xff] %v1672_v33 }
 0x5db   : > { %2459 = shalt.err (!%p2456_p4)
}
 0x5dc   : > { %s2460_s29 = scalar_lea.hbm %s3484_s12, 2048  ;;  %s2464_s25 = scalar_lea.hbm %s3573_s8, 4096 }
 0x5dd   : > { %p2461_p9 = scmp.ne.s32.totalorder %s3484_s12, %s2460_s29  ;;  %p2465_p8 = scmp.lt.u32.totalorder %s3484_s12, %s3573_s8 }
 0x5de   : > { %p2466_p13 = scmp.lt.u32.totalorder %s2464_s25, %s2460_s29  ;;  %p2468_p10 = scmp.lt.u32.totalorder %s2460_s29, %s3484_s12 }
 0x5df   : > { %p2462_p0 = pnand %p2461_p9, %p2742_p5 }
 0x5e0   : > { %p2467_p6 = por %p2466_p13, %p2465_p8 }
 0x5e1   : > { %p2463_p11 = pneg %p2462_p0 }
 0x5e2   : > { %p2469_p3 = por %p2468_p10, %p2467_p6 }
 0x5e4   : > { %p2470_p7 = pnand %p2469_p3, %p2463_p11 }
 0x5e6   : > { %2473 = shalt.err (!%p2470_p7)
}
 0x5e7   : > { %s2532_s14 = smov 128   ;;  %s2533_s30 = smov 8  }
 0x5e8   : > { %2134 = dma.vmem_to_hbm [thread:$0]  (%p2742_p5), %s3486_s10, 2048, %s3484_s12, %s1697_s13, %s2532_s14, %s2532_s14, %s2533_s30  }
 0x5e9 PF: > { %s3574_s27 = sld [smem:[#allocation15_spill]]  ;;  %s3575_s21 = sld [smem:[#allocation16_spill]] }
 0x5ea   : > { %p3577_p2 = scmp.ge.s32.totalorder %s2520_s20, 2 }
 0x5ef   : > { %s1725_s28 = sand.u32 1, %s3574_s27   ;;  %p3576_p12 = scmp.ne.s32.totalorder %s3575_s21, 0 }
 0x5f0   : > { %s1726_s16 = scalar_lea.sflag [#allocation4], %s1725_s28 }
 0x5f1   : > { %p2151_p1 = pnand %p3577_p2, %p3576_p12 }
 0x5f3   : > { %2503 = dma.done.wait (!%p2151_p1), %s1726_s16, 2048  }
 0x5f4   : > { %2505 = vsyncadd (!%p2151_p1), %s1726_s16, 4294965248  ;;  %s3578_s29 = smov %s2738_s17  ;;  %p26_p4 = scmp.ge.s32.totalorder %s2707_s15, 4  }
 0x5f5   : > { %s3579_s17 = smov %s2512_s18  ;;  %s3580_s18 = smov %s2516_s19 }
 0x5f6   : > { %s3581_s19 = smov %s3578_s29  ;;  %s3582_s20 = smov %s2707_s15 }
 0x5f7   :  { %28 = sbr.rel (!%p26_p4) target bundleno = 12 (0xc), region = 121 }
 0x5fe   :  { %1731 = vsyncpa [#allocation3], 1 }
 0x5ff   :  { %1733 = vsyncpa [#allocation3 + $0x1], 1 }
 0x600   :  { %1734 = vsyncpa [#allocation6], 1 }
 0x601   :  { %1735 = vsyncpa [#allocation9], 1 }
 0x602   :  { %1736 = vsyncpa [#allocation4], 1 }
 0x603   :  { %1738 = vsyncpa [#allocation4 + $0x1], 1 }

</bundles_post_ra>
